<compile_context>
chip_gen: v7x
topology: tpu7x:2x2x1
jax: 0.10.0
libtpu: 0.0.40
codegen_flags: <defaults>
</compile_context>

<pallas_src>
import numpy as np
import jax
import jax.numpy as jnp
from jax import lax
from jax.experimental import pallas as pl
from jax.experimental.pallas import tpu as pltpu

# ----- shapes (consistent with the module; BERT itself is external) -----
BG = 2           # example pairs per module forward == transformer sequence length
G = 8            # independent forwards fused into one call (batched into rows)
S = 8            # BERT sequence length
D = 32           # in_features == d_model
FFN = 2048       # nn.TransformerEncoderLayer default dim_feedforward
NUM_CLASS = 2
LN_EPS = 1e-5
COS_EPS = 1e-8

GB = G * BG      # pooled rows per stream (16)
R = 2 * GB       # transformer rows: [0:GB] = diff stream, [GB:2GB] = sum stream (32)


def _layer_norm(t, g, b):
    mu = jnp.mean(t, axis=-1, keepdims=True)
    var = jnp.mean((t - mu) ** 2, axis=-1, keepdims=True)
    return (t - mu) * lax.rsqrt(var + LN_EPS) * g + b


def wdn_kernel(h1_ref, h2_ref, m1_ref, m2_ref, wqkvo_ref, vecs_ref,
               w1_ref, b1_ref, w2t_ref, fc_ref, out_ref):
    gb = m1_ref.shape[0]
    d = h1_ref.shape[1]
    r = 2 * gb

    # ----- _select_embedding: masked-mean pooling as one matmul with a pre-normalized
    # block-diagonal pooling matrix (GB, GB*S) -----
    vec1 = jnp.dot(m1_ref[...], h1_ref[...], preferred_element_type=jnp.float32)  # (GB, D)
    vec2 = jnp.dot(m2_ref[...], h2_ref[...], preferred_element_type=jnp.float32)  # (GB, D)

    # concat (v1-v2, v1+v2): rows [0:GB] = diff stream, rows [GB:2GB] = sum stream,
    # each half ordered (group, pair).  Partner within a transformer sequence = row^1.
    x = jnp.concatenate([vec1 - vec2, vec1 + vec2], axis=0)          # (R, D) = (32, 32)

    # packed per-feature vectors: bq, bk, bv, bo, g1, be1, g2, be2, b2
    vecs = vecs_ref[...]                                             # (9, D)
    bq, bk, bv, bo = vecs[0:1], vecs[1:2], vecs[2:3], vecs[3:4]
    g1, be1, g2, be2, b2 = vecs[4:5], vecs[5:6], vecs[6:7], vecs[7:8], vecs[8:9]

    # ----- TransformerEncoderLayer (nhead=1, post-norm, ReLU FFN) -----
    # Packed QKV(+O) weights: one lane-dense (D, 4D) tile, a single MXU push for QKV.
    qkvo = jnp.dot(x, wqkvo_ref[...], preferred_element_type=jnp.float32)  # (R, 4D)
    q = qkvo[:, 0 * d:1 * d] + bq
    k = qkvo[:, 1 * d:2 * d] + bk
    v = qkvo[:, 2 * d:3 * d] + bv

    # partner swap (row i <-> row i^1) as a constant pair-permutation matmul (MXU)
    row = lax.broadcasted_iota(jnp.int32, (r, r), 0)
    col = lax.broadcasted_iota(jnp.int32, (r, r), 1)
    partner = row + 1 - 2 * (row % 2)                                # == row ^ 1
    perm = (col == partner).astype(jnp.float32)
    k_sw = jnp.dot(perm, k, preferred_element_type=jnp.float32)
    v_sw = jnp.dot(perm, v, preferred_element_type=jnp.float32)

    # Sequence length is 2, so softmax attention per row is over {self, partner}.
    scale = 1.0 / (float(d) ** 0.5)
    s_self = jnp.sum(q * k, axis=-1, keepdims=True) * scale          # (R, 1)
    s_cross = jnp.sum(q * k_sw, axis=-1, keepdims=True) * scale      # (R, 1)
    m = jnp.maximum(s_self, s_cross)
    e_self = jnp.exp(s_self - m)
    e_cross = jnp.exp(s_cross - m)
    inv = pl.reciprocal(e_self + e_cross, approx=True)               # EUP, ~free
    attn = (e_self * v + e_cross * v_sw) * inv                       # (R, D)
    attn = jnp.dot(attn, wqkvo_ref[:, 3 * d:],                       # out-proj slice
                   preferred_element_type=jnp.float32) + bo

    x = _layer_norm(x + attn, g1, be1)

    # FFN: bf16 weights / bf16 MXU inputs, f32 accumulation, f32 elementwise.
    ff = jnp.dot(x.astype(jnp.bfloat16), w1_ref[...],
                 preferred_element_type=jnp.float32) + b1_ref[...]   # (R, FFN)
    ff = jnp.maximum(ff, 0.0)
    # w2 stored transposed (D, FFN): contract both last dims (trans_b matmul).
    ff = lax.dot_general(ff.astype(jnp.bfloat16), w2t_ref[...],
                         dimension_numbers=(((1,), (1,)), ((), ())),
                         preferred_element_type=jnp.float32) + b2    # (R, D)
    x = _layer_norm(x + ff, g2, be2)

    # ----- CosineSimilarity(dim=1) between output[:, 0, :] (diff) and output[:, 1, :] (sum)
    a = x[0:gb]                                                      # (GB, D)
    b = x[gb:r]                                                      # (GB, D)
    dot = jnp.sum(a * b, axis=-1, keepdims=True)
    na = jnp.maximum(jnp.sqrt(jnp.sum(a * a, axis=-1, keepdims=True)), COS_EPS)
    nb = jnp.maximum(jnp.sqrt(jnp.sum(b * b, axis=-1, keepdims=True)), COS_EPS)
    cos = dot * pl.reciprocal(na * nb, approx=True)                  # (GB, 1)

    # ----- fc head Linear(2 -> num_class) + ReLU on the VPU; one lane-dense-ish store
    fc = fc_ref[...]                                                 # (3, NUM_CLASS)
    logits = cos * fc[0:1] + (1.0 - cos) * fc[1:2] + fc[2:3]
    out_ref[...] = jnp.maximum(logits, 0.0)                          # (GB, NUM_CLASS)


def init_params(key):
    ks = jax.random.split(key, 7)
    sd = 0.05
    bo = jax.random.normal(ks[1], (D,), jnp.float32) * sd
    b2 = jax.random.normal(ks[2], (D,), jnp.float32) * sd
    vecs = jnp.stack([
        jnp.zeros((D,), jnp.float32),  # bq
        jnp.zeros((D,), jnp.float32),  # bk
        jnp.zeros((D,), jnp.float32),  # bv
        bo,                            # bo (attn out-proj bias)
        jnp.ones((D,), jnp.float32),   # g1  (LayerNorm1 gamma)
        jnp.zeros((D,), jnp.float32),  # be1 (LayerNorm1 beta)
        jnp.ones((D,), jnp.float32),   # g2  (LayerNorm2 gamma)
        jnp.zeros((D,), jnp.float32),  # be2 (LayerNorm2 beta)
        b2,                            # b2  (FFN linear2 bias)
    ], axis=0)
    fcw = jax.random.normal(ks[5], (2, NUM_CLASS), jnp.float32) * sd   # pre-transposed
    fcb = jnp.zeros((1, NUM_CLASS), jnp.float32)
    return {
        # q|k|v|o projections packed (pre-transposed to (in, out)): one (32, 128) tile
        'wqkvo': jax.random.normal(ks[0], (D, 4 * D), jnp.float32) * sd,
        'vecs': vecs,                                                   # (9, D)
        # feed-forward (the only non-trivial bytes) in bf16; w2 stored TRANSPOSED
        'w1': (jax.random.normal(ks[3], (D, FFN), jnp.float32) * sd).astype(jnp.bfloat16),
        'b1': jax.random.normal(ks[4], (1, FFN), jnp.float32) * sd,
        'w2t': (jax.random.normal(ks[6], (D, FFN), jnp.float32) * sd).astype(jnp.bfloat16),
        'fc': jnp.concatenate([fcw, fcb], axis=0),                      # (3, NUM_CLASS)
    }


def word_disambiguation_forward(h1, h2, m1, m2, p):
    """h1, h2: (G, BG, S, D) BERT hidden states; m1, m2: (G, BG, S) {0,1} pos masks."""
    g, bg, s, d = h1.shape
    assert (bg, s, d) == (BG, S, D) and g * bg == GB

    # Pre-normalized block-diagonal pooling matrices over ALL G*BG rows:
    # M[i, j*S + t] = delta(i, j) * mask[j, t] / count(j)   (removes in-kernel divide
    # and the all-zero-mask div-by-zero hazard).  Shape (GB, GB*S) = (16, 128).
    def pool_mat(m):
        mf = m.reshape(g * bg, s)
        denom = jnp.maximum(jnp.sum(mf, axis=-1, keepdims=True), 1.0)
        mn = mf / denom
        eye = jnp.eye(g * bg, dtype=mf.dtype)
        return (eye[:, :, None] * mn[None, :, :]).reshape(g * bg, g * bg * s)

    h1f = h1.reshape(g * bg * s, d)            # (128, 32)
    h2f = h2.reshape(g * bg * s, d)
    args = (h1f, h2f, pool_mat(m1), pool_mat(m2),
            p['wqkvo'], p['vecs'], p['w1'], p['b1'], p['w2t'], p['fc'])

    # Single invocation (no grid): every operand is a whole-array VMEM block, DMA'd
    # exactly once; no per-step pipeline bookkeeping; one output store.
    out = pl.pallas_call(
        wdn_kernel,
        out_shape=jax.ShapeDtypeStruct((g * bg, NUM_CLASS), jnp.float32),
        compiler_params=pltpu.CompilerParams(
            vmem_limit_bytes=8 << 20,          # actual footprint well under 1 MiB
        ),
    )(*args)
    return out.reshape(g, bg, NUM_CLASS)


def reference_forward(h1, h2, m1, m2, p):
    """Pure-jnp mirror of the module math (per group), for verification.

    NOTE: this mirror applies the kernel's numeric policy (bf16 FFN weights/inputs,
    f32 accumulation); it therefore verifies the kernel against its own quantization
    policy rather than bit-exact fp32 torch parity.  The approx EUP reciprocals in
    the softmax / cosine denominators are covered by the test tolerance.
    """
    wqkvo = p['wqkvo']
    wq, wk = wqkvo[:, :D], wqkvo[:, D:2 * D]
    wv, wo = wqkvo[:, 2 * D:3 * D], wqkvo[:, 3 * D:]
    vecs = p['vecs']
    bq, bk, bv, bo = vecs[0], vecs[1], vecs[2], vecs[3]
    g1, be1, g2, be2, b2 = vecs[4], vecs[5], vecs[6], vecs[7], vecs[8]
    fcw, fcb = p['fc'][:2], p['fc'][2]

    def ln(t, gam, bet):
        mu = jnp.mean(t, -1, keepdims=True)
        var = jnp.mean((t - mu) ** 2, -1, keepdims=True)
        return (t - mu) * lax.rsqrt(var + LN_EPS) * gam + bet

    def one_group(h1g, h2g, m1g, m2g):
        den1 = jnp.maximum(jnp.sum(m1g, axis=-1, keepdims=True), 1.0)
        den2 = jnp.maximum(jnp.sum(m2g, axis=-1, keepdims=True), 1.0)
        vec1 = jnp.sum(h1g * (m1g / den1)[:, :, None], axis=1)        # (BG, D)
        vec2 = jnp.sum(h2g * (m2g / den2)[:, :, None], axis=1)
        x = jnp.stack([vec1 - vec2, vec1 + vec2], axis=0)             # (2, BG, D)

        q = x @ wq + bq
        k = x @ wk + bk
        v = x @ wv + bv
        sc = jnp.einsum('nld,nmd->nlm', q, k) / (D ** 0.5)
        pr = jax.nn.softmax(sc, axis=-1)
        attn = jnp.einsum('nlm,nmd->nld', pr, v) @ wo + bo
        x = ln(x + attn, g1, be1)

        ff = jnp.dot(x.astype(jnp.bfloat16), p['w1'],
                     preferred_element_type=jnp.float32) + p['b1']
        ff = jnp.maximum(ff, 0.0)
        ff = lax.dot_general(ff.astype(jnp.bfloat16), p['w2t'],
                             dimension_numbers=(((2,), (1,)), ((), ())),
                             preferred_element_type=jnp.float32) + b2
        x = ln(x + ff, g2, be2)

        a, b = x[0], x[1]
        na = jnp.maximum(jnp.linalg.norm(a, axis=-1, keepdims=True), COS_EPS)
        nb = jnp.maximum(jnp.linalg.norm(b, axis=-1, keepdims=True), COS_EPS)
        cos = jnp.sum(a * b, -1, keepdims=True) / (na * nb)
        feat = jnp.concatenate([cos, 1.0 - cos], axis=1)
        return jnp.maximum(feat @ fcw + fcb, 0.0)

    return jax.vmap(one_group)(h1, h2, m1, m2)


if __name__ == "__main__":
    key = jax.random.PRNGKey(0)
    k_h1, k_h2, k_m1, k_m2, k_p = jax.random.split(key, 5)

    # Synthetic "BERT output[0]" hidden states: G groups of BG example pairs each.
    h1 = jax.random.normal(k_h1, (G, BG, S, D), jnp.float32)
    h2 = jax.random.normal(k_h2, (G, BG, S, D), jnp.float32)

    # pos1_ids / pos2_ids encoded as {0,1} masks over sequence positions
    # (deterministic; at least one selected token per row).
    def make_mask(k):
        m = (jax.random.uniform(k, (G, BG, S)) < 0.35).astype(jnp.float32)
        return m.at[:, :, 1].set(1.0)

    m1 = make_mask(k_m1)
    m2 = make_mask(k_m2)
    params = init_params(k_p)

    out = word_disambiguation_forward(h1, h2, m1, m2, params)
    out = jax.block_until_ready(out)

    ref = reference_forward(h1, h2, m1, m2, params)
    # Tolerance accounts for EUP approx-reciprocal (softmax/cosine denominators)
    # and bf16 FFN weights/inputs.
    np.testing.assert_allclose(np.asarray(out), np.asarray(ref), rtol=1e-2, atol=1e-3)
    assert out.shape == (G, BG, NUM_CLASS)

    print("KERNEL_OK")
</pallas_src>

<mosaic_0001>
module attributes {stable_mosaic.version = 11 : i64} {
  func.func @wdn_kernel(%arg0: memref<128x32xf32, #tpu.memory_space<vmem>>, %arg1: memref<128x32xf32, #tpu.memory_space<vmem>>, %arg2: memref<16x128xf32, #tpu.memory_space<vmem>>, %arg3: memref<16x128xf32, #tpu.memory_space<vmem>>, %arg4: memref<32x128xf32, #tpu.memory_space<vmem>>, %arg5: memref<9x32xf32, #tpu.memory_space<vmem>>, %arg6: memref<32x2048xbf16, #tpu.memory_space<vmem>>, %arg7: memref<1x2048xf32, #tpu.memory_space<vmem>>, %arg8: memref<32x2048xbf16, #tpu.memory_space<vmem>>, %arg9: memref<3x2xf32, #tpu.memory_space<vmem>>, %arg10: memref<16x2xf32, #tpu.memory_space<vmem>>) attributes {dimension_semantics = [], scalar_prefetch = 0 : i64, scratch_operands = 0 : i64, tpu.core_type = #tpu.core_type<tc>} {
    %c0 = arith.constant 0 : index
    %c0_0 = arith.constant 0 : index
    %0 = vector.load %arg2[%c0, %c0_0] : memref<16x128xf32, #tpu.memory_space<vmem>>, vector<16x128xf32>
    %c0_1 = arith.constant 0 : index
    %c0_2 = arith.constant 0 : index
    %1 = vector.load %arg0[%c0_1, %c0_2] : memref<128x32xf32, #tpu.memory_space<vmem>>, vector<128x32xf32>
    %cst = arith.constant dense<0.000000e+00> : vector<16x32xf32>
    %2 = tpu.matmul %0, %1, %cst {dimension_numbers = #tpu.dot_dimension_numbers<[1], [0], [0], [1], [0, 0, 1, 1], [], []>} : vector<16x128xf32>, vector<128x32xf32>, vector<16x32xf32> -> vector<16x32xf32>
    %c0_3 = arith.constant 0 : index
    %c0_4 = arith.constant 0 : index
    %3 = vector.load %arg3[%c0_3, %c0_4] : memref<16x128xf32, #tpu.memory_space<vmem>>, vector<16x128xf32>
    %c0_5 = arith.constant 0 : index
    %c0_6 = arith.constant 0 : index
    %4 = vector.load %arg1[%c0_5, %c0_6] : memref<128x32xf32, #tpu.memory_space<vmem>>, vector<128x32xf32>
    %cst_7 = arith.constant dense<0.000000e+00> : vector<16x32xf32>
    %5 = tpu.matmul %3, %4, %cst_7 {dimension_numbers = #tpu.dot_dimension_numbers<[1], [0], [0], [1], [0, 0, 1, 1], [], []>} : vector<16x128xf32>, vector<128x32xf32>, vector<16x32xf32> -> vector<16x32xf32>
    %6 = arith.subf %2, %5 : vector<16x32xf32>
    %7 = arith.addf %2, %5 : vector<16x32xf32>
    %8 = tpu.concatenate %6, %7 in 0 : vector<16x32xf32>, vector<16x32xf32> -> vector<32x32xf32>
    %c0_8 = arith.constant 0 : index
    %c0_9 = arith.constant 0 : index
    %9 = vector.load %arg5[%c0_8, %c0_9] : memref<9x32xf32, #tpu.memory_space<vmem>>, vector<9x32xf32>
    %10 = vector.extract_strided_slice %9 {offsets = [0, 0], sizes = [1, 32], strides = [1, 1]} : vector<9x32xf32> to vector<1x32xf32>
    %11 = vector.extract_strided_slice %9 {offsets = [1, 0], sizes = [1, 32], strides = [1, 1]} : vector<9x32xf32> to vector<1x32xf32>
    %12 = vector.extract_strided_slice %9 {offsets = [2, 0], sizes = [1, 32], strides = [1, 1]} : vector<9x32xf32> to vector<1x32xf32>
    %13 = vector.extract_strided_slice %9 {offsets = [3, 0], sizes = [1, 32], strides = [1, 1]} : vector<9x32xf32> to vector<1x32xf32>
    %14 = vector.extract_strided_slice %9 {offsets = [4, 0], sizes = [1, 32], strides = [1, 1]} : vector<9x32xf32> to vector<1x32xf32>
    %15 = vector.extract_strided_slice %9 {offsets = [5, 0], sizes = [1, 32], strides = [1, 1]} : vector<9x32xf32> to vector<1x32xf32>
    %16 = vector.extract_strided_slice %9 {offsets = [6, 0], sizes = [1, 32], strides = [1, 1]} : vector<9x32xf32> to vector<1x32xf32>
    %17 = vector.extract_strided_slice %9 {offsets = [7, 0], sizes = [1, 32], strides = [1, 1]} : vector<9x32xf32> to vector<1x32xf32>
    %18 = vector.extract_strided_slice %9 {offsets = [8, 0], sizes = [1, 32], strides = [1, 1]} : vector<9x32xf32> to vector<1x32xf32>
    %c0_10 = arith.constant 0 : index
    %c0_11 = arith.constant 0 : index
    %19 = vector.load %arg4[%c0_10, %c0_11] : memref<32x128xf32, #tpu.memory_space<vmem>>, vector<32x128xf32>
    %cst_12 = arith.constant dense<0.000000e+00> : vector<32x128xf32>
    %20 = tpu.matmul %8, %19, %cst_12 {dimension_numbers = #tpu.dot_dimension_numbers<[1], [0], [0], [1], [0, 0, 1, 1], [], []>} : vector<32x32xf32>, vector<32x128xf32>, vector<32x128xf32> -> vector<32x128xf32>
    %21 = vector.extract_strided_slice %20 {offsets = [0, 0], sizes = [32, 32], strides = [1, 1]} : vector<32x128xf32> to vector<32x32xf32>
    %22 = vector.broadcast %10 : vector<1x32xf32> to vector<32x32xf32>
    %23 = arith.addf %21, %22 : vector<32x32xf32>
    %24 = vector.extract_strided_slice %20 {offsets = [0, 32], sizes = [32, 32], strides = [1, 1]} : vector<32x128xf32> to vector<32x32xf32>
    %25 = vector.broadcast %11 : vector<1x32xf32> to vector<32x32xf32>
    %26 = arith.addf %24, %25 : vector<32x32xf32>
    %27 = vector.extract_strided_slice %20 {offsets = [0, 64], sizes = [32, 32], strides = [1, 1]} : vector<32x128xf32> to vector<32x32xf32>
    %28 = vector.broadcast %12 : vector<1x32xf32> to vector<32x32xf32>
    %29 = arith.addf %27, %28 : vector<32x32xf32>
    %30 = tpu.iota {dimensions = array<i32: 0>} : vector<32x32xi32>
    %31 = tpu.iota {dimensions = array<i32: 1>} : vector<32x32xi32>
    %c1_i32 = arith.constant 1 : i32
    %32 = vector.broadcast %c1_i32 : i32 to vector<32x32xi32>
    %33 = arith.addi %30, %32 : vector<32x32xi32>
    %c2_i32 = arith.constant 2 : i32
    %c0_i32 = arith.constant 0 : i32
    %34 = arith.cmpi eq, %c2_i32, %c0_i32 : i32
    %c1_i32_13 = arith.constant 1 : i32
    %35 = arith.select %34, %c1_i32_13, %c2_i32 : i32
    %36 = vector.broadcast %35 : i32 to vector<32x32xi32>
    %37 = arith.remsi %30, %36 : vector<32x32xi32>
    %c0_i32_14 = arith.constant 0 : i32
    %38 = vector.broadcast %c0_i32_14 : i32 to vector<32x32xi32>
    %39 = arith.cmpi ne, %37, %38 : vector<32x32xi32>
    %c0_i32_15 = arith.constant 0 : i32
    %40 = vector.broadcast %c0_i32_15 : i32 to vector<32x32xi32>
    %41 = arith.cmpi slt, %37, %40 : vector<32x32xi32>
    %c0_i32_16 = arith.constant 0 : i32
    %42 = arith.cmpi slt, %35, %c0_i32_16 : i32
    %43 = vector.broadcast %42 : i1 to vector<32x32xi1>
    %44 = vector.broadcast %43 : vector<32x32xi1> to vector<32x32xi1>
    %45 = arith.xori %41, %44 : vector<32x32xi1>
    %46 = arith.andi %45, %39 : vector<32x32xi1>
    %47 = vector.broadcast %35 : i32 to vector<32x32xi32>
    %48 = arith.addi %37, %47 : vector<32x32xi32>
    %49 = arith.select %46, %48, %37 : vector<32x32xi1>, vector<32x32xi32>
    %c2_i32_17 = arith.constant 2 : i32
    %50 = vector.broadcast %c2_i32_17 : i32 to vector<32x32xi32>
    %51 = arith.muli %50, %49 : vector<32x32xi32>
    %52 = arith.subi %33, %51 : vector<32x32xi32>
    %53 = arith.cmpi eq, %31, %52 : vector<32x32xi32>
    %54 = arith.extui %53 : vector<32x32xi1> to vector<32x32xi32>
    %55 = arith.sitofp %54 : vector<32x32xi32> to vector<32x32xf32>
    %cst_18 = arith.constant dense<0.000000e+00> : vector<32x32xf32>
    %56 = tpu.matmul %55, %26, %cst_18 {dimension_numbers = #tpu.dot_dimension_numbers<[1], [0], [0], [1], [0, 0, 1, 1], [], []>} : vector<32x32xf32>, vector<32x32xf32>, vector<32x32xf32> -> vector<32x32xf32>
    %cst_19 = arith.constant dense<0.000000e+00> : vector<32x32xf32>
    %57 = tpu.matmul %55, %29, %cst_19 {dimension_numbers = #tpu.dot_dimension_numbers<[1], [0], [0], [1], [0, 0, 1, 1], [], []>} : vector<32x32xf32>, vector<32x32xf32>, vector<32x32xf32> -> vector<32x32xf32>
    %58 = arith.mulf %23, %26 : vector<32x32xf32>
    %cst_20 = arith.constant dense<0.000000e+00> : vector<32xf32>
    %59 = vector.multi_reduction <add>, %58, %cst_20 [1] : vector<32x32xf32> to vector<32xf32>
    %60 = vector.shape_cast %59 : vector<32xf32> to vector<32x1xf32>
    %cst_21 = arith.constant 0.176776692 : f32
    %61 = vector.broadcast %cst_21 : f32 to vector<32x1xf32>
    %62 = arith.mulf %60, %61 : vector<32x1xf32>
    %63 = arith.mulf %23, %56 : vector<32x32xf32>
    %cst_22 = arith.constant dense<0.000000e+00> : vector<32xf32>
    %64 = vector.multi_reduction <add>, %63, %cst_22 [1] : vector<32x32xf32> to vector<32xf32>
    %65 = vector.shape_cast %64 : vector<32xf32> to vector<32x1xf32>
    %cst_23 = arith.constant 0.176776692 : f32
    %66 = vector.broadcast %cst_23 : f32 to vector<32x1xf32>
    %67 = arith.mulf %65, %66 : vector<32x1xf32>
    %68 = arith.maximumf %62, %67 : vector<32x1xf32>
    %69 = arith.subf %62, %68 : vector<32x1xf32>
    %70 = math.exp %69 : vector<32x1xf32>
    %71 = arith.subf %67, %68 : vector<32x1xf32>
    %72 = math.exp %71 : vector<32x1xf32>
    %73 = arith.addf %70, %72 : vector<32x1xf32>
    %74 = tpu.reciprocal %73 {approx = true} : vector<32x1xf32> -> vector<32x1xf32>
    %75 = vector.broadcast %70 : vector<32x1xf32> to vector<32x32xf32>
    %76 = arith.mulf %75, %29 : vector<32x32xf32>
    %77 = vector.broadcast %72 : vector<32x1xf32> to vector<32x32xf32>
    %78 = arith.mulf %77, %57 : vector<32x32xf32>
    %79 = arith.addf %76, %78 : vector<32x32xf32>
    %80 = vector.broadcast %74 : vector<32x1xf32> to vector<32x32xf32>
    %81 = arith.mulf %79, %80 : vector<32x32xf32>
    %c0_24 = arith.constant 0 : index
    %c96 = arith.constant 96 : index
    %82 = vector.load %arg4[%c0_24, %c96] : memref<32x128xf32, #tpu.memory_space<vmem>>, vector<32x32xf32>
    %cst_25 = arith.constant dense<0.000000e+00> : vector<32x32xf32>
    %83 = tpu.matmul %81, %82, %cst_25 {dimension_numbers = #tpu.dot_dimension_numbers<[1], [0], [0], [1], [0, 0, 1, 1], [], []>} : vector<32x32xf32>, vector<32x32xf32>, vector<32x32xf32> -> vector<32x32xf32>
    %84 = vector.broadcast %13 : vector<1x32xf32> to vector<32x32xf32>
    %85 = arith.addf %83, %84 : vector<32x32xf32>
    %86 = arith.addf %8, %85 : vector<32x32xf32>
    %cst_26 = arith.constant dense<0.000000e+00> : vector<32xf32>
    %87 = vector.multi_reduction <add>, %86, %cst_26 [1] : vector<32x32xf32> to vector<32xf32>
    %88 = vector.shape_cast %87 : vector<32xf32> to vector<32x1xf32>
    %cst_27 = arith.constant 3.200000e+01 : f32
    %89 = vector.broadcast %cst_27 : f32 to vector<32x1xf32>
    %90 = arith.divf %88, %89 : vector<32x1xf32>
    %91 = vector.broadcast %90 : vector<32x1xf32> to vector<32x32xf32>
    %92 = arith.subf %86, %91 : vector<32x32xf32>
    %93 = arith.mulf %92, %92 : vector<32x32xf32>
    %cst_28 = arith.constant dense<0.000000e+00> : vector<32xf32>
    %94 = vector.multi_reduction <add>, %93, %cst_28 [1] : vector<32x32xf32> to vector<32xf32>
    %95 = vector.shape_cast %94 : vector<32xf32> to vector<32x1xf32>
    %cst_29 = arith.constant 3.200000e+01 : f32
    %96 = vector.broadcast %cst_29 : f32 to vector<32x1xf32>
    %97 = arith.divf %95, %96 : vector<32x1xf32>
    %98 = vector.broadcast %90 : vector<32x1xf32> to vector<32x32xf32>
    %99 = arith.subf %86, %98 : vector<32x32xf32>
    %cst_30 = arith.constant 9.99999974E-6 : f32
    %100 = vector.broadcast %cst_30 : f32 to vector<32x1xf32>
    %101 = arith.addf %97, %100 : vector<32x1xf32>
    %102 = math.rsqrt %101 : vector<32x1xf32>
    %103 = vector.broadcast %102 : vector<32x1xf32> to vector<32x32xf32>
    %104 = arith.mulf %99, %103 : vector<32x32xf32>
    %105 = vector.broadcast %14 : vector<1x32xf32> to vector<32x32xf32>
    %106 = arith.mulf %104, %105 : vector<32x32xf32>
    %107 = vector.broadcast %15 : vector<1x32xf32> to vector<32x32xf32>
    %108 = arith.addf %106, %107 : vector<32x32xf32>
    %109 = arith.truncf %108 : vector<32x32xf32> to vector<32x32xbf16>
    %c0_31 = arith.constant 0 : index
    %c0_32 = arith.constant 0 : index
    %110 = vector.load %arg6[%c0_31, %c0_32] : memref<32x2048xbf16, #tpu.memory_space<vmem>>, vector<32x2048xbf16>
    %cst_33 = arith.constant dense<0.000000e+00> : vector<32x2048xf32>
    %111 = tpu.matmul %109, %110, %cst_33 {dimension_numbers = #tpu.dot_dimension_numbers<[1], [0], [0], [1], [0, 0, 1, 1], [], []>} : vector<32x32xbf16>, vector<32x2048xbf16>, vector<32x2048xf32> -> vector<32x2048xf32>
    %c0_34 = arith.constant 0 : index
    %c0_35 = arith.constant 0 : index
    %112 = vector.load %arg7[%c0_34, %c0_35] : memref<1x2048xf32, #tpu.memory_space<vmem>>, vector<1x2048xf32>
    %113 = vector.broadcast %112 : vector<1x2048xf32> to vector<32x2048xf32>
    %114 = arith.addf %111, %113 : vector<32x2048xf32>
    %cst_36 = arith.constant 0.000000e+00 : f32
    %115 = vector.broadcast %cst_36 : f32 to vector<32x2048xf32>
    %116 = arith.maximumf %114, %115 : vector<32x2048xf32>
    %117 = arith.truncf %116 : vector<32x2048xf32> to vector<32x2048xbf16>
    %c0_37 = arith.constant 0 : index
    %c0_38 = arith.constant 0 : index
    %118 = vector.load %arg8[%c0_37, %c0_38] : memref<32x2048xbf16, #tpu.memory_space<vmem>>, vector<32x2048xbf16>
    %cst_39 = arith.constant dense<0.000000e+00> : vector<32x32xf32>
    %119 = tpu.matmul %117, %118, %cst_39 {dimension_numbers = #tpu.dot_dimension_numbers<[1], [1], [0], [0], [0, 0, 1, 0], [], []>} : vector<32x2048xbf16>, vector<32x2048xbf16>, vector<32x32xf32> -> vector<32x32xf32>
    %120 = vector.broadcast %18 : vector<1x32xf32> to vector<32x32xf32>
    %121 = arith.addf %119, %120 : vector<32x32xf32>
    %122 = arith.addf %108, %121 : vector<32x32xf32>
    %cst_40 = arith.constant dense<0.000000e+00> : vector<32xf32>
    %123 = vector.multi_reduction <add>, %122, %cst_40 [1] : vector<32x32xf32> to vector<32xf32>
    %124 = vector.shape_cast %123 : vector<32xf32> to vector<32x1xf32>
    %cst_41 = arith.constant 3.200000e+01 : f32
    %125 = vector.broadcast %cst_41 : f32 to vector<32x1xf32>
    %126 = arith.divf %124, %125 : vector<32x1xf32>
    %127 = vector.broadcast %126 : vector<32x1xf32> to vector<32x32xf32>
    %128 = arith.subf %122, %127 : vector<32x32xf32>
    %129 = arith.mulf %128, %128 : vector<32x32xf32>
    %cst_42 = arith.constant dense<0.000000e+00> : vector<32xf32>
    %130 = vector.multi_reduction <add>, %129, %cst_42 [1] : vector<32x32xf32> to vector<32xf32>
    %131 = vector.shape_cast %130 : vector<32xf32> to vector<32x1xf32>
    %cst_43 = arith.constant 3.200000e+01 : f32
    %132 = vector.broadcast %cst_43 : f32 to vector<32x1xf32>
    %133 = arith.divf %131, %132 : vector<32x1xf32>
    %134 = vector.broadcast %126 : vector<32x1xf32> to vector<32x32xf32>
    %135 = arith.subf %122, %134 : vector<32x32xf32>
    %cst_44 = arith.constant 9.99999974E-6 : f32
    %136 = vector.broadcast %cst_44 : f32 to vector<32x1xf32>
    %137 = arith.addf %133, %136 : vector<32x1xf32>
    %138 = math.rsqrt %137 : vector<32x1xf32>
    %139 = vector.broadcast %138 : vector<32x1xf32> to vector<32x32xf32>
    %140 = arith.mulf %135, %139 : vector<32x32xf32>
    %141 = vector.broadcast %16 : vector<1x32xf32> to vector<32x32xf32>
    %142 = arith.mulf %140, %141 : vector<32x32xf32>
    %143 = vector.broadcast %17 : vector<1x32xf32> to vector<32x32xf32>
    %144 = arith.addf %142, %143 : vector<32x32xf32>
    %145 = vector.extract_strided_slice %144 {offsets = [0, 0], sizes = [16, 32], strides = [1, 1]} : vector<32x32xf32> to vector<16x32xf32>
    %146 = vector.extract_strided_slice %144 {offsets = [16, 0], sizes = [16, 32], strides = [1, 1]} : vector<32x32xf32> to vector<16x32xf32>
    %147 = arith.mulf %145, %146 : vector<16x32xf32>
    %cst_45 = arith.constant dense<0.000000e+00> : vector<16xf32>
    %148 = vector.multi_reduction <add>, %147, %cst_45 [1] : vector<16x32xf32> to vector<16xf32>
    %149 = vector.shape_cast %148 : vector<16xf32> to vector<16x1xf32>
    %150 = arith.mulf %145, %145 : vector<16x32xf32>
    %cst_46 = arith.constant dense<0.000000e+00> : vector<16xf32>
    %151 = vector.multi_reduction <add>, %150, %cst_46 [1] : vector<16x32xf32> to vector<16xf32>
    %152 = vector.shape_cast %151 : vector<16xf32> to vector<16x1xf32>
    %153 = math.sqrt %152 : vector<16x1xf32>
    %cst_47 = arith.constant 9.99999993E-9 : f32
    %154 = vector.broadcast %cst_47 : f32 to vector<16x1xf32>
    %155 = arith.maximumf %153, %154 : vector<16x1xf32>
    %156 = arith.mulf %146, %146 : vector<16x32xf32>
    %cst_48 = arith.constant dense<0.000000e+00> : vector<16xf32>
    %157 = vector.multi_reduction <add>, %156, %cst_48 [1] : vector<16x32xf32> to vector<16xf32>
    %158 = vector.shape_cast %157 : vector<16xf32> to vector<16x1xf32>
    %159 = math.sqrt %158 : vector<16x1xf32>
    %cst_49 = arith.constant 9.99999993E-9 : f32
    %160 = vector.broadcast %cst_49 : f32 to vector<16x1xf32>
    %161 = arith.maximumf %159, %160 : vector<16x1xf32>
    %162 = arith.mulf %155, %161 : vector<16x1xf32>
    %163 = tpu.reciprocal %162 {approx = true} : vector<16x1xf32> -> vector<16x1xf32>
    %164 = arith.mulf %149, %163 : vector<16x1xf32>
    %c0_50 = arith.constant 0 : index
    %c0_51 = arith.constant 0 : index
    %165 = vector.load %arg9[%c0_50, %c0_51] : memref<3x2xf32, #tpu.memory_space<vmem>>, vector<3x2xf32>
    %166 = vector.extract_strided_slice %165 {offsets = [0, 0], sizes = [1, 2], strides = [1, 1]} : vector<3x2xf32> to vector<1x2xf32>
    %167 = vector.broadcast %164 : vector<16x1xf32> to vector<16x2xf32>
    %168 = vector.broadcast %166 : vector<1x2xf32> to vector<16x2xf32>
    %169 = arith.mulf %167, %168 : vector<16x2xf32>
    %cst_52 = arith.constant 1.000000e+00 : f32
    %170 = vector.broadcast %cst_52 : f32 to vector<16x1xf32>
    %171 = arith.subf %170, %164 : vector<16x1xf32>
    %172 = vector.extract_strided_slice %165 {offsets = [1, 0], sizes = [1, 2], strides = [1, 1]} : vector<3x2xf32> to vector<1x2xf32>
    %173 = vector.broadcast %171 : vector<16x1xf32> to vector<16x2xf32>
    %174 = vector.broadcast %172 : vector<1x2xf32> to vector<16x2xf32>
    %175 = arith.mulf %173, %174 : vector<16x2xf32>
    %176 = arith.addf %169, %175 : vector<16x2xf32>
    %177 = vector.extract_strided_slice %165 {offsets = [2, 0], sizes = [1, 2], strides = [1, 1]} : vector<3x2xf32> to vector<1x2xf32>
    %178 = vector.broadcast %177 : vector<1x2xf32> to vector<16x2xf32>
    %179 = arith.addf %176, %178 : vector<16x2xf32>
    %cst_53 = arith.constant 0.000000e+00 : f32
    %180 = vector.broadcast %cst_53 : f32 to vector<16x2xf32>
    %181 = arith.maximumf %179, %180 : vector<16x2xf32>
    %c0_54 = arith.constant 0 : index
    %c0_55 = arith.constant 0 : index
    %182 = vector.load %arg10[%c0_54, %c0_55] : memref<16x2xf32, #tpu.memory_space<vmem>>, vector<16x2xf32>
    tpu.vector_store %arg10[%c0_54, %c0_55], %181 {strides = array<i32>} : memref<16x2xf32, #tpu.memory_space<vmem>>, vector<16x2xf32>,
    return
  }
}

</mosaic_0001>

<bundles_post_ra>
// kernel: tpu_custom_call.1
= control target key start
LH: loop header
LB: loop body
LE: loop exit
PB: predicated region body
PF: predicated region fallthrough
CT: control target
= control target key end

     0   :  { %15 = vsyncpa [#allocation3], 0  ;;  %s3029_s13 = smov [#allocation2]   ;;  %s3805_s0 = inlined_call_operand.vmem [shape: f32[128,32], index: 0, kind: input, shape index: {}]   ;;  %s3806_s1 = inlined_call_operand.vmem [shape: f32[128,32], index: 1, kind: input, shape index: {}]   ;;  %s3807_s2 = inlined_call_operand.vmem [shape: f32[16,128], index: 2, kind: input, shape index: {}]   ;;  %s3808_s3 = inlined_call_operand.vmem [shape: f32[16,128], index: 3, kind: input, shape index: {}]   ;;  %s3809_s4 = inlined_call_operand.vmem [shape: f32[32,128], index: 4, kind: input, shape index: {}]   ;;  %s3810_s5 = inlined_call_operand.vmem [shape: f32[9,32], index: 5, kind: input, shape index: {}]   ;;  %s3811_s6 = inlined_call_operand.vmem [shape: bf16[32,2048], index: 6, kind: input, shape index: {}]   ;;  %s3812_s7 = inlined_call_operand.vmem [shape: f32[1,2048], index: 7, kind: input, shape index: {}]   ;;  %s3813_s8 = inlined_call_operand.hbm [shape: bf16[32,2048], index: 8, kind: input, shape index: {}]   ;;  %s3814_s9 = inlined_call_operand.vmem [shape: f32[3,2], index: 9, kind: input, shape index: {}]   ;;  %s3815_s10 = inlined_call_operand.vmem [shape: f32[16,2], index: 10, kind: output, shape index: {}]  }
   0x1   :  { %s37_s14 = sshll.u32 %s3029_s13, 4  ;;  %s3005_s17 = scalar_lea.hbm %s3813_s8, 4096  ;;  %s38_s14 = int_to_ptr.vmem [resolvable:$true] %s37_s14 }
   0x2   :  { %p3006_p0 = scmp.ne.s32.totalorder %s3813_s8, %s3005_s17  ;;  %p3009_p1 = scmp.lt.u32.totalorder %s3005_s17, %s3813_s8 }
   0x4   :  { %p3011_p2 = pnand %p3009_p1, %p3006_p0 }
   0x6   :  { %3014 = shalt.err (!%p3011_p2)
}
   0x7   :  { %s3015_s22 = scalar_lea.vmem %s38_s14, 4096  ;;  %p3020_p4 = scmp.lt.s32.totalorder %s38_s14, %s38_s14 }
   0x8   :  { %p3016_p3 = scmp.ne.s32.totalorder %s38_s14, %s3015_s22  ;;  %p3021_p5 = scmp.lt.s32.totalorder %s3015_s22, %s3015_s22 }
   0xa   :  { %p3022_p6 = por %p3021_p5, %p3020_p4 }
   0xc   :  { %p3023_p7 = pnand %p3022_p6, %p3016_p3 }
   0xe   :  { %3026 = shalt.err (!%p3023_p7)
}
   0xf   :  { %s3030_s23 = smov 1024   ;;  %s3031_s24 = smov 64  }
  0x10   :  { %43 = dma.hbm_to_vmem [thread:$0]  %s3813_s8, 4096, %s38_s14, [#allocation3], %s3030_s23, %s3030_s23, %s3031_s24  }
  0x11   :  { %3027 = dma.done.wait [#allocation3], 4096  }
  0x12   :  { %3028 = vsyncadd [#allocation3], 4294963200  ;;  %v52_v0 = vld [vmem:[%s3805_s0] sm:$0xff]  ;;  %v53_v1 = vld [vmem:[%s3805_s0 + $0x8] sm:$0xff]  ;;  %v344_v58 = vlaneseq  ;;  %vm246_vm0 = vcmask 261120   ;;  %s3034_s25 = smov 96  }
  0x13   :  { %v145_v2 = vld [vmem:[%s3806_s1] sm:$0xff]  ;;  %v2829_v3 = vpack.c.bf16 %v53_v1, %v52_v0  ;;  %v146_v4 = vld [vmem:[%s3806_s1 + $0x8] sm:$0xff]  ;;  %v54_v5 = vld [vmem:[%s3805_s0 + $0x10] sm:$0xff]  ;;  %vm2526_vm13 = vcmask 15360  }
  0x14   :  { %v55_v6 = vld [vmem:[%s3805_s0 + $0x18] sm:$0xff]  ;;  %v2861_v7 = vpack.c.bf16 %v146_v4, %v145_v2  ;;  %v147_v9 = vld [vmem:[%s3806_s1 + $0x10] sm:$0xff]  ;;  %v56_v11 = vld [vmem:[%s3805_s0 + $0x20] sm:$0xff]  ;;  %v3236_v59 = vshrl.u32 %v344_v58, 7 }
  0x15   :  { %v2833_v8 = vpack.c.bf16 %v55_v6, %v54_v5  ;;  %v148_v10 = vld [vmem:[%s3806_s1 + $0x18] sm:$0xff]  ;;  %2830 = vmatprep.subr.bf16.mxu0 %v2829_v3  ;;  %v57_v13 = vld [vmem:[%s3805_s0 + $0x28] sm:$0xff]  ;;  %v149_v14 = vld [vmem:[%s3806_s1 + $0x20] sm:$0xff] }
  0x16   :  { %v2865_v12 = vpack.c.bf16 %v148_v10, %v147_v9  ;;  %v150_v15 = vld [vmem:[%s3806_s1 + $0x28] sm:$0xff]  ;;  %2862 = vmatprep.subr.bf16.mxu1 %v2861_v7  ;;  %2832 = vmatpush3.bf16.msra.mxu0 %v2829_v3  ;;  %v2837_v16 = vpack.c.bf16 %v57_v13, %v56_v11  ;;  %v58_v18 = vld [vmem:[%s3805_s0 + $0x30] sm:$0xff]  ;;  %v59_v19 = vld [vmem:[%s3805_s0 + $0x38] sm:$0xff]  ;;  %v3244_v61 = vsub.s32 1, %v3236_v59  ;;  %v383_v10 = vadd.s32 1, %v3236_v59 }
  0x17   :  { %2864 = vmatpush3.bf16.msra.mxu1 %v2861_v7  ;;  %2834 = vmatprep.subr.bf16.mxu0 %v2833_v8  ;;  %v2869_v17 = vpack.c.bf16 %v150_v15, %v149_v14  ;;  %v151_v20 = vld [vmem:[%s3806_s1 + $0x30] sm:$0xff]  ;;  %v152_v21 = vld [vmem:[%s3806_s1 + $0x38] sm:$0xff]  ;;  %v2841_v22 = vpack.c.bf16 %v59_v19, %v58_v18  ;;  %v60_v24 = vld [vmem:[%s3805_s0 + $0x40] sm:$0xff]  ;;  %v378_v7 = vadd.s32 8, %v3236_v59  ;;  %v380_v15 = vadd.s32 24, %v3236_v59 }
  0x18   :  { %2866 = vmatprep.subr.bf16.mxu1 %v2865_v12  ;;  %v2873_v23 = vpack.c.bf16 %v152_v21, %v151_v20  ;;  %v61_v25 = vld [vmem:[%s3805_s0 + $0x48] sm:$0xff]  ;;  %v50_v26 = vld [vmem:[%s3807_s2] sm:$0xff]  ;;  %v62_v32 = vld [vmem:[%s3805_s0 + $0x50] sm:$0xff]  ;;  %v3271_v19 = vsub.s32 0, %v3236_v59 }
  0x19   :  { %v153_v27 = vld [vmem:[%s3806_s1 + $0x40] sm:$0xff]  ;;  %v154_v28 = vld [vmem:[%s3806_s1 + $0x48] sm:$0xff]  ;;  %2735 = vmatprep.mubr.f32.mxu0 %v50_v26  ;;  %v2845_v30 = vpack.c.bf16 %v61_v25, %v60_v24  ;;  %v63_v33 = vld [vmem:[%s3805_s0 + $0x58] sm:$0xff]  ;;  %v398_v9 = vand.u32 1, %v378_v7  ;;  %v384_v13 = vadd.s32 1, %v378_v7  ;;  %v412_v21 = vand.u32 1, %v380_v15 }
  0x1a   :  { %2836 = vmatpush3.bf16.msra.mxu0 %v2833_v8  ;;  %v143_v29 = vld [vmem:[%s3808_s3] sm:$0xff]  ;;  %v2877_v31 = vpack.c.bf16 %v154_v28, %v153_v27  ;;  %v155_v34 = vld [vmem:[%s3806_s1 + $0x50] sm:$0xff]  ;;  %v156_v35 = vld [vmem:[%s3806_s1 + $0x58] sm:$0xff]  ;;  %v2849_v36 = vpack.c.bf16 %v63_v33, %v62_v32  ;;  %v391_v8 = vand.u32 1, %v3236_v59  ;;  %v3033_v25 = vmov 0.0  }
  0x1b   :  { %2868 = vmatpush3.bf16.msra.mxu1 %v2865_v12  ;;  %2838 = vmatprep.subr.bf16.mxu0 %v2837_v16  ;;  %v2881_v37 = vpack.c.bf16 %v156_v35, %v155_v34  ;;  %v64_v38 = vld [vmem:[%s3805_s0 + $0x60] sm:$0xff]  ;;  %v65_v39 = vld [vmem:[%s3805_s0 + $0x68] sm:$0xff]  ;;  %v66_v44 = vld [vmem:[%s3805_s0 + $0x70] sm:$0xff]  ;;  %v379_v12 = vadd.s32 16, %v3236_v59  ;;  %v436_v14 = vmul.u32 2, %v398_v9  ;;  %v386_v27 = vadd.s32 1, %v380_v15 }
  0x1c   :  { %2870 = vmatprep.subr.bf16.mxu1 %v2869_v17  ;;  %2770 = vmatprep.mubr.f32.mxu1 %v143_v29  ;;  %v157_v40 = vld [vmem:[%s3806_s1 + $0x60] sm:$0xff]  ;;  %v158_v41 = vld [vmem:[%s3806_s1 + $0x68] sm:$0xff]  ;;  %v2853_v42 = vpack.c.bf16 %v65_v39, %v64_v38  ;;  %v67_v45 = vld [vmem:[%s3805_s0 + $0x78] sm:$0xff]  ;;  %v435_v11 = vmul.u32 2, %v391_v8  ;;  %v438_v28 = vmul.u32 2, %v412_v21  ;;  %v3280_v39 = vsub.s32 2, %v3236_v59 }
  0x1d   :  { %v2885_v43 = vpack.c.bf16 %v158_v41, %v157_v40  ;;  %v159_v46 = vld [vmem:[%s3806_s1 + $0x70] sm:$0xff]  ;;  %v160_v47 = vld [vmem:[%s3806_s1 + $0x78] sm:$0xff]  ;;  %v2857_v48 = vpack.c.bf16 %v67_v45, %v66_v44  ;;  %v3209_v50 = vld [vmem:[%s3809_s4] sm:$0xff]  ;;  %v405_v18 = vand.u32 1, %v379_v12  ;;  %v440_v20 = vsub.s32 %v384_v13, %v436_v14 }
  0x1e   :  { %2840 = vmatpush3.bf16.msra.mxu0 %v2837_v16  ;;  %v2889_v49 = vpack.c.bf16 %v160_v47, %v159_v46  ;;  %v3214_v51 = vld [vmem:[%s3809_s4 + $0x8] sm:$0xff]  ;;  %v3227_v55 = vld [vmem:[%s3809_s4 + $0x10] sm:$0xff]  ;;  %v3232_v56 = vld [vmem:[%s3809_s4 + $0x18] sm:$0xff]  ;;  %s3032_s4 = smov 32   ;;  %v382_v16 = vand.u32 127, %v344_v58  ;;  %v442_v34 = vsub.s32 %v386_v27, %v438_v28 }
  0x1f   :  { %2872 = vmatpush3.bf16.msra.mxu1 %v2869_v17  ;;  %2842 = vmatprep.subr.bf16.mxu0 %v2841_v22  ;;  %v2893_v52 = vpack.c.bf16 %v3214_v51, %v3209_v50  ;;  %v51_v53 = vld [vmem:[%s3807_s2 + $0x8] sm:$0xff]  ;;  %v2897_v57 = vpack.c.bf16 %v3232_v56, %v3227_v55  ;;  %v3241_v60 = vld [vmem:[%s3810_s5] sm:$0xff]  ;;  %v439_v17 = vsub.s32 %v383_v10, %v435_v11  ;;  %v437_v24 = vmul.u32 2, %v405_v18 }
  0x20   :  { %2874 = vmatprep.subr.bf16.mxu1 %v2873_v23  ;;  %v144_v54 = vld [vmem:[%s3808_s3 + $0x8] sm:$0xff]  ;;  %v355_v62 = vrot.slane %v3241_v60, %v3244_v61  ;;  %vm444_vm2 = vcmp.eq.s32.totalorder %v382_v16, %v440_v20  ;;  %vm446_vm4 = vcmp.eq.s32.totalorder %v382_v16, %v442_v34  ;;  %v367_v46 = vrot.slane %v3241_v60, %v3280_v39 }
  0x21   :  { %vm443_vm1 = vcmp.eq.s32.totalorder %v382_v16, %v439_v17  ;;  %v2541_v40 = vsel %vm446_vm4, 1.0, %v3033_v25 }
  0x22   :  { %2844 = vmatpush3.bf16.msra.mxu0 %v2841_v22  ;;  %357 = vrot.lane.b32.xlu0 %v355_v62, %s3032_s4  ;;  %v2538_v26 = vsel %vm443_vm1, 1.0, %v3033_v25 }
  0x23   :  { %2876 = vmatpush3.bf16.msra.mxu1 %v2873_v23  ;;  %2846 = vmatprep.subr.bf16.mxu0 %v2845_v30  ;;  %v385_v23 = vadd.s32 1, %v379_v12 }
  0x24   :  { %2878 = vmatprep.subr.bf16.mxu1 %v2877_v31 }
  0x26   :  { %2848 = vmatpush3.bf16.msra.mxu0 %v2845_v30  ;;  %v3274_v30 = vsel %vm444_vm2, 1.0, %v3033_v25 }
  0x27   :  { %2880 = vmatpush3.bf16.msra.mxu1 %v2877_v31  ;;  %2850 = vmatprep.subr.bf16.mxu0 %v2849_v36  ;;  %v441_v31 = vsub.s32 %v385_v23, %v437_v24 }
  0x28   :  { %2882 = vmatprep.subr.bf16.mxu1 %v2881_v37 }
  0x29   :  { %vm445_vm3 = vcmp.eq.s32.totalorder %v382_v16, %v441_v31 }
  0x2a   :  { %2852 = vmatpush3.bf16.msra.mxu0 %v2849_v36  ;;  %v347_v36 = vrot.slane %v3241_v60, %v3271_v19 }
  0x2b   :  { %2884 = vmatpush3.bf16.msra.mxu1 %v2881_v37  ;;  %2854 = vmatprep.subr.bf16.mxu0 %v2853_v42  ;;  %v2540_v37 = vsel %vm445_vm3, 1.0, %v3033_v25 }
  0x2c   :  { %2886 = vmatprep.subr.bf16.mxu1 %v2885_v43 }
  0x2e   :  { %2856 = vmatpush3.bf16.msra.mxu0 %v2853_v42 }
  0x2f   :  { %2888 = vmatpush3.bf16.msra.mxu1 %v2885_v43  ;;  %2858 = vmatprep.subr.bf16.mxu0 %v2857_v48 }
  0x30   :  { %2890 = vmatprep.subr.bf16.mxu1 %v2889_v49 }
  0x32   :  { %2860 = vmatpush3.bf16.msra.mxu0 %v2857_v48 }
  0x33   :  { %2892 = vmatpush3.bf16.msra.mxu1 %v2889_v49  ;;  %2894 = vmatprep.subr.bf16.mxu0 %v2893_v52 }
  0x35   :  { %2736 = vmatmul.mubr.f32.vlgmr.msra.gmra.mrb[0].mxu0 %v51_v53 }
  0x36   :  { %2771 = vmatmul.mubr.f32.vlgmr.msra.gmra.mrb[0].mxu1 %v144_v54  ;;  %2896 = vmatpush3.bf16.msra.mxu0 %v2893_v52 }
  0x37   :  { %2898 = vmatprep.subr.bf16.mxu0 %v2897_v57  ;;  %2795 = vmatprep.mubr.msk.f32.mxu1 %vm246_vm0, %v2538_v26 }
  0x3a   :  { %2900 = vmatpush3.bf16.msra.mxu0 %v2897_v57 }
  0x94   :  { %v358_v22 = vpop.permute.xlu0 %357 }
 0x108   :  { %v2737_v63 = vpop.f32.mrb[0].mxu0 }
 0x109   :  { %v2772_v0 = vpop.f32.mrb[0].mxu1  ;;  %v134_v1 = vpop.f32.mrb[1].mxu0 }
 0x10a   :  { %v3249_v2 = vsub.f32 %v2737_v63, %v2772_v0  ;;  %v3251_v3 = vadd.f32 %v2772_v0, %v2737_v63  ;;  %v227_v4 = vpop.f32.mrb[1].mxu1 }
 0x10b   :  { %v3253_v5 = vsub.f32 %v134_v1, %v227_v4  ;;  %v3255_v6 = vadd.f32 %v227_v4, %v134_v1 }
 0x10d   :  { %2781 = vmatprep.mubr.msk.f32.mxu0 %vm246_vm0, %v3253_v5 }
 0x10e   :  { %2782 = vmatmul.mubr.msk.f32.vlgmr.msra.gmra.mrb[2].mxu0 %vm246_vm0, %v3249_v2 }
 0x10f   :  { %2784 = vmatprep.mubr.msk.f32.mxu0 %vm246_vm0, %v3255_v6 }
 0x112   :  { %2785 = vmatmul.mubr.msk.f32.gmra.mrb[4].mxu0 %vm246_vm0, %v3251_v3 }
 0x113   :  { %2809 = vmatprep.mubr.msk.f32.mxu0 %vm246_vm0, %v2538_v26 }
 0x1e1   :  { %v2783_v29 = vpop.f32.mrb[2].mxu0 }
 0x1e2   :  { %v325_v32 = vpop.f32.mrb[3].mxu0  ;;  %v361_v33 = vadd.f32 %v2783_v29, %v358_v22  ;;  %v349_v10 = vadd.f32 %v2783_v29, %v347_v36 }
 0x1e3   :  { %v360_v35 = vadd.f32 %v358_v22, %v325_v32  ;;  %v348_v8 = vadd.f32 %v347_v36, %v325_v32 }
 0x1e4   :  { %461 = vrot.lane.b32.xlu1 %v361_v33, %s3034_s25 }
 0x1e5   :  { %459 = vrot.lane.b32.xlu0 %v360_v35, %s3034_s25  ;;  %v2786_v38 = vpop.f32.mrb[4].mxu0 }
 0x1e6   :  { %v3282_v41 = vadd.f32 %v2786_v38, %v347_v36  ;;  %v363_v42 = vadd.f32 %v2786_v38, %v358_v22  ;;  %v335_v43 = vpop.f32.mrb[5].mxu0 }
 0x1e7   :  { %v3284_v44 = vadd.f32 %v347_v36, %v335_v43  ;;  %v362_v45 = vadd.f32 %v358_v22, %v335_v43 }
 0x1e9   :  { %465 = vrot.lane.b32.xlu0 %v363_v42, %s3034_s25  ;;  %463 = vrot.lane.b32.xlu1 %v362_v45, %s3034_s25 }
 0x1ed   :  { %369 = vrot.lane.b32.xlu1 %v367_v46, %s3031_s24 }
 0x256   :  { %v462_v47 = vpop.permute.xlu1 %461 }
 0x257   :  { %v460_v48 = vpop.permute.xlu0 %459  ;;  %v670_v11 = vmul.f32 %v462_v47, %v349_v10 }
 0x258   :  { %v2901_v49 = vpack.c.bf16 %v462_v47, %v460_v48  ;;  %v669_v9 = vmul.f32 %v460_v48, %v348_v8 }
 0x259   :  { %v676_v13 = vsel %vm246_vm0, %v670_v11, 0.0 }
 0x25a   :  { %2902 = vmatprep.subr.bf16.mxu1 %v2901_v49  ;;  %v673_v12 = vsel %vm246_vm0, %v669_v9, 0.0 }
 0x25b   :  { %2904 = vmatpush3.bf16.msra.mxu1 %v2901_v49  ;;  %v466_v52 = vpop.permute.xlu0 %465  ;;  %v464_v53 = vpop.permute.xlu1 %463 }
 0x25c   :  { %v2905_v54 = vpack.c.bf16 %v466_v52, %v464_v53  ;;  %v671_v57 = vmul.f32 %v464_v53, %v3284_v44  ;;  %v672_v33 = vmul.f32 %v466_v52, %v3282_v41 }
 0x25e   :  { %2906 = vmatprep.subr.bf16.mxu1 %v2905_v54  ;;  %v679_v35 = vsel %vm246_vm0, %v671_v57, 0.0 }
 0x25f   :  { %2908 = vmatpush3.bf16.msra.mxu1 %v2905_v54  ;;  %v370_v58 = vpop.permute.xlu1 %369 }
 0x260   :  { %v3290_v62 = vadd.f32 %v370_v58, %v335_v43  ;;  %v3292_v63 = vadd.f32 %v2786_v38, %v370_v58  ;;  %v3294_v0 = vadd.f32 %v370_v58, %v325_v32  ;;  %v3296_v1 = vadd.f32 %v2783_v29, %v370_v58 }
 0x262   :  { %2796 = vmatmul.mubr.msk.f32.vlgmr.msra.gmra.mrb[2].mxu1 %vm246_vm0, %v3274_v30  ;;  %v2937_v4 = vpack.i.bf16 %v3292_v63, %v3290_v62  ;;  %v2932_v7 = vpack.i.bf16 %v3296_v1, %v3294_v0 }
 0x263   :  { %2798 = vmatprep.mubr.msk.f32.mxu1 %vm246_vm0, %v2540_v37 }
 0x264   :  { %2938 = vrot.lane.b32.xlu1 %v2937_v4, %s3031_s24  ;;  %2933 = vrot.lane.b32.xlu0 %v2932_v7, %s3031_s24 }
 0x266   :  { %2799 = vmatmul.mubr.msk.f32.gmra.mrb[4].mxu1 %vm246_vm0, %v2541_v40 }
 0x283   :  { %674 = vadd.xlane.f32.xlu0 %v673_v12 }
 0x287   :  { %677 = vadd.xlane.f32.xlu0 %v676_v13 }
 0x2d6   :  { %v2939_v14 = vpop.permute.xlu1 %2938  ;;  %v2934_v15 = vpop.permute.xlu0 %2933 }
 0x2d7   :  { %v2941_v16 = vunpack.i.h.bf16 %v2939_v14  ;;  %v2940_v17 = vunpack.i.l.bf16 %v2939_v14  ;;  %v2936_v18 = vunpack.i.h.bf16 %v2934_v15  ;;  %v2935_v20 = vunpack.i.l.bf16 %v2934_v15 }
 0x2d9   :  { %v2909_v21 = vpack.c.bf16 %v2936_v18, %v2935_v20  ;;  %v2913_v22 = vpack.c.bf16 %v2941_v16, %v2940_v17 }
 0x2db   :  { %2910 = vmatprep.subr.bf16.mxu0 %v2909_v21 }
 0x2dc   :  { %2912 = vmatpush3.bf16.msra.mxu0 %v2909_v21 }
 0x2dd   :  { %2914 = vmatprep.subr.bf16.mxu0 %v2913_v22 }
 0x2e0   :  { %2916 = vmatpush3.bf16.msra.mxu0 %v2913_v22 }
 0x2e3   :  { %2810 = vmatmul.mubr.msk.f32.vlgmr.msra.gmra.mrb[6].mxu0 %vm246_vm0, %v3274_v30 }
 0x2e4   :  { %2812 = vmatprep.mubr.msk.f32.mxu0 %vm246_vm0, %v2540_v37  ;;  %v682_v37 = vsel %vm246_vm0, %v672_v33, 0.0 }
 0x2e7   :  { %2813 = vmatmul.mubr.msk.f32.gmra.mrb[8].mxu0 %vm246_vm0, %v2541_v40 }
 0x335   :  { %v2797_v23 = vpop.f32.mrb[2].mxu1 }
 0x336   :  { %v690_v24 = vmul.f32 %v2797_v23, %v349_v10  ;;  %v549_v25 = vpop.f32.mrb[3].mxu1 }
 0x337   :  { %v689_v26 = vmul.f32 %v549_v25, %v348_v8 }
 0x338   :  { %v696_v27 = vsel %vm246_vm0, %v690_v24, 0.0 }
 0x339   :  { %v2800_v28 = vpop.f32.mrb[4].mxu1  ;;  %697 = vadd.xlane.f32.xlu0 %v696_v27  ;;  %v693_v29 = vsel %vm246_vm0, %v689_v26, 0.0 }
 0x33a   :  { %v692_v31 = vmul.f32 %v2800_v28, %v3282_v41  ;;  %v559_v32 = vpop.f32.mrb[5].mxu1  ;;  %694 = vadd.xlane.f32.xlu1 %v693_v29 }
 0x33b   :  { %v691_v30 = vmul.f32 %v559_v32, %v3284_v44  ;;  %v675_v44 = vpop.xlane.xlu0 %674 }
 0x33c   :  { %v702_v36 = vsel %vm246_vm0, %v692_v31, 0.0  ;;  %v685_v49 = vmul.f32 0.17677669, %v675_v44  ;;  %v2942_v44 = vpack.i.bf16 %v3214_v51, %v3209_v50  ;;  %v2947_v50 = vpack.i.bf16 %v3232_v56, %v3227_v55 }
 0x33d   :  { %v699_v34 = vsel %vm246_vm0, %v691_v30, 0.0 }
 0x33e   :  { %700 = vadd.xlane.f32.xlu0 %v699_v34  ;;  %680 = vadd.xlane.f32.xlu1 %v679_v35 }
 0x33f   :  { %v678_v45 = vpop.xlane.xlu0 %677 }
 0x340   :  { %v686_v46 = vmul.f32 0.17677669, %v678_v45 }
 0x342   :  { %703 = vadd.xlane.f32.xlu0 %v702_v36  ;;  %683 = vadd.xlane.f32.xlu1 %v682_v37 }
 0x3b6   :  { %v2811_v38 = vpop.f32.mrb[6].mxu0 }
 0x3b7   :  { %v650_v40 = vpop.f32.mrb[7].mxu0 }
 0x3ba   :  { %v3323_v42 = vpop.f32.mrb[8].mxu0 }
 0x3bb   :  { %v660_v43 = vpop.f32.mrb[9].mxu0 }
 0x3c6   :  { %v698_v41 = vpop.xlane.xlu0 %697 }
 0x3c7   :  { %v706_v47 = vmul.f32 0.17677669, %v698_v41  ;;  %v695_v48 = vpop.xlane.xlu1 %694 }
 0x3c8   :  { %v705_v52 = vmul.f32 0.17677669, %v695_v48 }
 0x3c9   :  { %v710_v53 = vmax.f32 %v686_v46, %v706_v47 }
 0x3ca   :  { %v709_v54 = vmax.f32 %v685_v49, %v705_v52 }
 0x3cb   :  { %v714_v57 = vsub.f32 %v686_v46, %v710_v53  ;;  %v726_v58 = vsub.f32 %v706_v47, %v710_v53  ;;  %v701_v4 = vpop.xlane.xlu0 %700  ;;  %v681_v7 = vpop.xlane.xlu1 %680 }
 0x3cc   :  { %v713_v8 = vsub.f32 %v685_v49, %v709_v54  ;;  %v725_v9 = vsub.f32 %v705_v52, %v709_v54  ;;  %v707_v10 = vmul.f32 0.17677669, %v701_v4  ;;  %v687_v11 = vmul.f32 0.17677669, %v681_v7 }
 0x3cd   :  { %v719_v12 = vmul.f32 1.442695, %v714_v57  ;;  %v731_v13 = vmul.f32 1.442695, %v726_v58 }
 0x3ce   :  { %v717_v14 = vmul.f32 1.442695, %v713_v8  ;;  %v729_v15 = vmul.f32 1.442695, %v725_v9  ;;  %v711_v16 = vmax.f32 %v687_v11, %v707_v10 }
 0x3cf   :  { %2952 = vpow2.f32 %v719_v12  ;;  %v704_v17 = vpop.xlane.xlu0 %703  ;;  %v684_v18 = vpop.xlane.xlu1 %683 }
 0x3d0   :  { %2954 = vpow2.f32 %v731_v13  ;;  %v715_v20 = vsub.f32 %v687_v11, %v711_v16  ;;  %v727_v21 = vsub.f32 %v707_v10, %v711_v16  ;;  %v708_v22 = vmul.f32 0.17677669, %v704_v17 }
 0x3d1   :  { %2956 = vpow2.f32 %v717_v14  ;;  %v688_v23 = vmul.f32 0.17677669, %v684_v18 }
 0x3d2   :  { %2958 = vpow2.f32 %v729_v15  ;;  %v721_v24 = vmul.f32 1.442695, %v715_v20  ;;  %v733_v25 = vmul.f32 1.442695, %v727_v21 }
 0x3d3   :  { %v712_v26 = vmax.f32 %v688_v23, %v708_v22 }
 0x3d4   :  { %2960 = vpow2.f32 %v721_v24 }
 0x3d5   :  { %2962 = vpow2.f32 %v733_v25  ;;  %v716_v27 = vsub.f32 %v688_v23, %v712_v26  ;;  %v728_v28 = vsub.f32 %v708_v22, %v712_v26  ;;  %v3349_v26 = vsub.s32 3, %v3236_v59 }
 0x3d7   :  { %v723_v29 = vmul.f32 1.442695, %v716_v27  ;;  %v735_v31 = vmul.f32 1.442695, %v728_v28  ;;  %v780_v27 = vrot.slane %v3241_v60, %v3349_v26 }
 0x3d9   :  { %v2953_v32 = vpop.eup %2952  ;;  %2964 = vpow2.f32 %v723_v29 }
 0x3da   :  { %v2955_v30 = vpop.eup %2954  ;;  %2966 = vpow2.f32 %v735_v31  ;;  %v746_v51 = vmul.f32 %v2953_v32, %v3296_v1 }
 0x3db   :  { %v2957_v33 = vpop.eup %2956  ;;  %v750_v34 = vmul.f32 %v2955_v30, %v2811_v38  ;;  %v738_v35 = vadd.f32 %v2955_v30, %v2953_v32 }
 0x3dc   :  { %v2959_v36 = vpop.eup %2958  ;;  %v745_v54 = vmul.f32 %v2957_v33, %v3294_v0 }
 0x3dd   :  { %v749_v37 = vmul.f32 %v2959_v36, %v650_v40  ;;  %759 = vrot.lane.b32.xlu0 %v750_v34, %s3031_s24  ;;  %v737_v45 = vadd.f32 %v2959_v36, %v2957_v33  ;;  %2968 = vrcp.f32 %v738_v35 }
 0x3de   :  { %v2961_v41 = vpop.eup %2960 }
 0x3df   :  { %v2963_v46 = vpop.eup %2962  ;;  %757 = vrot.lane.b32.xlu1 %v749_v37, %s3031_s24  ;;  %2970 = vrcp.f32 %v737_v45  ;;  %v747_v55 = vmul.f32 %v2961_v41, %v3290_v62 }
 0x3e0   :  { %v751_v47 = vmul.f32 %v2963_v46, %v660_v43  ;;  %v739_v48 = vadd.f32 %v2963_v46, %v2961_v41 }
 0x3e1   :  { %2943 = vrot.lane.b32.xlu0 %v2942_v44, %s3032_s4 }
 0x3e2   :  { %2972 = vrcp.f32 %v739_v48 }
 0x3e3   :  { %v2965_v49 = vpop.eup %2964  ;;  %761 = vrot.lane.b32.xlu1 %v751_v47, %s3031_s24 }
 0x3e4   :  { %v2967_v38 = vpop.eup %2966  ;;  %v748_v13 = vmul.f32 %v2965_v49, %v3292_v63 }
 0x3e5   :  { %v752_v40 = vmul.f32 %v2967_v38, %v3323_v42  ;;  %v740_v52 = vadd.f32 %v2967_v38, %v2965_v49 }
 0x3e7   :  { %763 = vrot.lane.b32.xlu1 %v752_v40, %s3031_s24  ;;  %v2969_v57 = vpop.eup %2968  ;;  %2974 = vrcp.f32 %v740_v52 }
 0x3e9   :  { %v2971_v7 = vpop.eup %2970 }
 0x3eb   :  { %2948 = vrot.lane.b32.xlu1 %v2947_v50, %s3032_s4 }
 0x3ec   :  { %v2973_v0 = vpop.eup %2972 }
 0x3f1   :  { %v2975_v17 = vpop.eup %2974 }
 0x44f   :  { %v760_v43 = vpop.permute.xlu0 %759 }
 0x450   :  { %v770_v53 = vadd.f32 %v760_v43, %v746_v51 }
 0x451   :  { %v758_v58 = vpop.permute.xlu1 %757 }
 0x452   :  { %v769_v42 = vadd.f32 %v758_v58, %v745_v54  ;;  %v774_v4 = vmul.f32 %v2969_v57, %v770_v53 }
 0x453   :  { %v2944_v8 = vpop.permute.xlu0 %2943 }
 0x454   :  { %787 = vrot.lane.b32.xlu1 %v774_v4, %s3031_s24  ;;  %v773_v56 = vmul.f32 %v2971_v7, %v769_v42  ;;  %v2946_v9 = vunpack.i.h.bf16 %v2944_v8  ;;  %v2945_v10 = vunpack.i.l.bf16 %v2944_v8 }
 0x455   :  { %v762_v11 = vpop.permute.xlu1 %761 }
 0x456   :  { %v771_v1 = vadd.f32 %v762_v11, %v747_v55  ;;  %785 = vrot.lane.b32.xlu0 %v773_v56, %s3031_s24  ;;  %v2917_v12 = vpack.c.bf16 %v2946_v9, %v2945_v10  ;;  %v977_v56 = vld [vmem:[%s3811_s6] sm:$0xff]  ;;  %v978_v10 = vld [vmem:[%s3811_s6 + $0x8] sm:$0xff] }
 0x457   :  { %v985_v9 = vld [vmem:[%s3811_s6 + $0x40] sm:$0xff] }
 0x458   :  { %v775_v14 = vmul.f32 %v2973_v0, %v771_v1  ;;  %2918 = vmatprep.subr.bf16.mxu1 %v2917_v12  ;;  %v2555_v11 = vcombine.high %v977_v56, %v985_v9  ;;  %v986_v1 = vld [vmem:[%s3811_s6 + $0x48] sm:$0xff] }
 0x459   :  { %v764_v15 = vpop.permute.xlu1 %763  ;;  %2920 = vmatpush3.bf16.msra.mxu1 %v2917_v12  ;;  %v2554_v12 = vcombine.low %v977_v56, %v985_v9  ;;  %v2556_v0 = vcombine.low %v978_v10, %v986_v1 }
 0x45a   :  { %v772_v16 = vadd.f32 %v764_v15, %v748_v13  ;;  %789 = vrot.lane.b32.xlu0 %v775_v14, %s3031_s24  ;;  %v2557_v13 = vcombine.high %v978_v10, %v986_v1  ;;  %1259 = vmatprep.subr.bf16.mxu0 %v2555_v11  ;;  %v993_v14 = vld [vmem:[%s3811_s6 + $0x80] sm:$0xff]  ;;  %v982_v11 = vld [vmem:[%s3811_s6 + $0x28] sm:$0xff] }
 0x45b   :  { %1260 = vmatpush1.bf16.msra.mxu0 %v2554_v12  ;;  %v1001_v15 = vld [vmem:[%s3811_s6 + $0xc0] sm:$0xff]  ;;  %v990_v1 = vld [vmem:[%s3811_s6 + $0x68] sm:$0xff] }
 0x45c   :  { %v776_v62 = vmul.f32 %v2975_v17, %v772_v16  ;;  %v994_v16 = vld [vmem:[%s3811_s6 + $0x88] sm:$0xff]  ;;  %v2571_v17 = vcombine.high %v993_v14, %v1001_v15  ;;  %v989_v10 = vld [vmem:[%s3811_s6 + $0x60] sm:$0xff] }
 0x45d   :  { %v2949_v18 = vpop.permute.xlu1 %2948 }
 0x45e   :  { %791 = vrot.lane.b32.xlu1 %v776_v62, %s3031_s24  ;;  %v2951_v20 = vunpack.i.h.bf16 %v2949_v18  ;;  %v2950_v21 = vunpack.i.l.bf16 %v2949_v18  ;;  %v1002_v62 = vld [vmem:[%s3811_s6 + $0xc8] sm:$0xff]  ;;  %v2570_v18 = vcombine.low %v993_v14, %v1001_v15  ;;  %1261 = vmatprep.subr.bf16.mxu0 %v2571_v17  ;;  %v2565_v14 = vcombine.high %v982_v11, %v990_v1 }
 0x460   :  { %v2921_v22 = vpack.c.bf16 %v2951_v20, %v2950_v21  ;;  %v2572_v20 = vcombine.low %v994_v16, %v1002_v62  ;;  %v2573_v21 = vcombine.high %v994_v16, %v1002_v62  ;;  %1262 = vmatpush1.bf16.msra.mxu0 %v2570_v18 }
 0x462   :  { %2922 = vmatprep.subr.bf16.mxu1 %v2921_v22 }
 0x463   :  { %2924 = vmatpush3.bf16.msra.mxu1 %v2921_v22  ;;  %v3035_v22 = vmov 0  }
 0x464   :  { %1312 = vmatprep.subr.bf16.mxu1 %v2557_v13  ;;  %1291 = vmatprep.mubr.bf16.mxu0 %v3035_v22 }
 0x4c6   :  { %v788_v24 = vpop.permute.xlu1 %787 }
 0x4c8   :  { %v786_v23 = vpop.permute.xlu0 %785 }
 0x4c9   :  { %2823 = vmatprep.mubr.msk.f32.mxu1 %vm246_vm0, %v786_v23  ;;  %v979_v23 = vld [vmem:[%s3811_s6 + $0x10] sm:$0xff] }
 0x4ca   :  { %2824 = vmatmul.mubr.msk.f32.vlgmr.msra.gmra.mrb[6].mxu1 %vm246_vm0, %v788_v24  ;;  %v987_v24 = vld [vmem:[%s3811_s6 + $0x50] sm:$0xff] }
 0x4cb   :  { %1313 = vmatpush1.bf16.msra.mxu1 %v2556_v0 }
 0x4cc   :  { %v790_v63 = vpop.permute.xlu0 %789  ;;  %1314 = vmatprep.subr.bf16.mxu1 %v2573_v21  ;;  %v1005_v21 = vld [vmem:[%s3811_s6 + $0xe0] sm:$0xff] }
 0x4cd   :  { %2826 = vmatprep.mubr.msk.f32.mxu1 %vm246_vm0, %v790_v63  ;;  %v980_v63 = vld [vmem:[%s3811_s6 + $0x18] sm:$0xff] }
 0x4cf   :  { %1315 = vmatpush1.bf16.msra.mxu1 %v2572_v20 }
 0x4d0   :  { %v792_v25 = vpop.permute.xlu1 %791 }
 0x4d1   :  { %2827 = vmatmul.mubr.msk.f32.gmra.mrb[8].mxu1 %vm246_vm0, %v792_v25  ;;  %v2558_v25 = vcombine.low %v979_v23, %v987_v24 }
 0x4d2   :  { %1344 = vmatprep.mubr.bf16.mxu1 %v3035_v22 }
 0x59d   :  { %v2825_v28 = vpop.f32.mrb[6].mxu1 }
 0x59e   :  { %v889_v29 = vadd.f32 %v2825_v28, %v780_v27  ;;  %v883_v31 = vpop.f32.mrb[7].mxu1  ;;  %v988_v28 = vld [vmem:[%s3811_s6 + $0x58] sm:$0xff] }
 0x59f   :  { %v884_v32 = vadd.f32 %v883_v31, %v780_v27  ;;  %v2561_v31 = vcombine.high %v980_v63, %v988_v28 }
 0x5a0   :  { %v903_v30 = vadd.f32 %v889_v29, %v3249_v2  ;;  %v2560_v29 = vcombine.low %v980_v63, %v988_v28 }
 0x5a1   :  { %v902_v33 = vadd.f32 %v884_v32, %v3253_v5  ;;  %1418 = vmatprep.subr.bf16.mxu1 %v2561_v31  ;;  %v991_v31 = vld [vmem:[%s3811_s6 + $0x70] sm:$0xff] }
 0x5a2   :  { %v909_v34 = vsel %vm246_vm0, %v903_v30, 0.0 }
 0x5a3   :  { %910 = vadd.xlane.f32.xlu1 %v909_v34  ;;  %v906_v35 = vsel %vm246_vm0, %v902_v33, 0.0 }
 0x5a4   :  { %v2828_v36 = vpop.f32.mrb[8].mxu1  ;;  %907 = vadd.xlane.f32.xlu0 %v906_v35 }
 0x5a5   :  { %v893_v37 = vpop.f32.mrb[9].mxu1  ;;  %v899_v44 = vadd.f32 %v2828_v36, %v780_v27 }
 0x5a6   :  { %v894_v45 = vadd.f32 %v893_v37, %v780_v27  ;;  %v2559_v27 = vcombine.high %v979_v23, %v987_v24  ;;  %v998_v23 = vld [vmem:[%s3811_s6 + $0xa8] sm:$0xff] }
 0x5a7   :  { %v905_v47 = vadd.f32 %v899_v44, %v3251_v3  ;;  %v1006_v24 = vld [vmem:[%s3811_s6 + $0xe8] sm:$0xff] }
 0x5a8   :  { %v904_v41 = vadd.f32 %v894_v45, %v3255_v6  ;;  %1365 = vmatprep.subr.bf16.mxu0 %v2559_v27  ;;  %v3420_v45 = vsub.s32 4, %v3236_v59  ;;  %v983_v27 = vld [vmem:[%s3811_s6 + $0x30] sm:$0xff] }
 0x5a9   :  { %v915_v2 = vsel %vm246_vm0, %v905_v47, 0.0 }
 0x5aa   :  { %v912_v46 = vsel %vm246_vm0, %v904_v41, 0.0 }
 0x5ab   :  { %913 = vadd.xlane.f32.xlu0 %v912_v46  ;;  %v3423_v46 = vsub.s32 5, %v3236_v59 }
 0x5af   :  { %916 = vadd.xlane.f32.xlu0 %v915_v2 }
 0x630   :  { %v911_v5 = vpop.xlane.xlu1 %910 }
 0x631   :  { %v920_v48 = vmul.f32 0.03125, %v911_v5  ;;  %v908_v49 = vpop.xlane.xlu0 %907  ;;  %v962_v5 = vrot.slane %v3241_v60, %v3420_v45 }
 0x632   :  { %v919_v38 = vmul.f32 0.03125, %v908_v49 }
 0x633   :  { %v3361_v40 = vsub.f32 %v903_v30, %v920_v48 }
 0x634   :  { %v3363_v52 = vsub.f32 %v902_v33, %v919_v38 }
 0x635   :  { %v928_v50 = vmul.f32 %v3361_v40, %v3361_v40 }
 0x636   :  { %v927_v6 = vmul.f32 %v3363_v52, %v3363_v52 }
 0x637   :  { %v934_v3 = vsel %vm246_vm0, %v928_v50, 0.0  ;;  %v970_v50 = vrot.slane %v3241_v60, %v3423_v46  ;;  %v996_v60 = vld [vmem:[%s3811_s6 + $0x98] sm:$0xff] }
 0x638   :  { %935 = vadd.xlane.f32.xlu0 %v934_v3  ;;  %v914_v51 = vpop.xlane.xlu0 %913  ;;  %v931_v43 = vsel %vm246_vm0, %v927_v6, 0.0 }
 0x639   :  { %v921_v53 = vmul.f32 0.03125, %v914_v51  ;;  %932 = vadd.xlane.f32.xlu1 %v931_v43 }
 0x63b   :  { %v3371_v54 = vsub.f32 %v904_v41, %v921_v53 }
 0x63c   :  { %v917_v57 = vpop.xlane.xlu0 %916 }
 0x63d   :  { %v922_v58 = vmul.f32 0.03125, %v917_v57  ;;  %v929_v42 = vmul.f32 %v3371_v54, %v3371_v54  ;;  %v995_v57 = vld [vmem:[%s3811_s6 + $0x90] sm:$0xff] }
 0x63f   :  { %v3375_v4 = vsub.f32 %v905_v47, %v922_v58  ;;  %v937_v7 = vsel %vm246_vm0, %v929_v42, 0.0  ;;  %v1003_v42 = vld [vmem:[%s3811_s6 + $0xd0] sm:$0xff] }
 0x640   :  { %938 = vadd.xlane.f32.xlu1 %v937_v7  ;;  %v2575_v56 = vcombine.high %v995_v57, %v1003_v42 }
 0x641   :  { %v930_v8 = vmul.f32 %v3375_v4, %v3375_v4 }
 0x643   :  { %v940_v55 = vsel %vm246_vm0, %v930_v8, 0.0  ;;  %v981_v8 = vld [vmem:[%s3811_s6 + $0x20] sm:$0xff] }
 0x644   :  { %941 = vadd.xlane.f32.xlu0 %v940_v55  ;;  %v2563_v13 = vcombine.high %v981_v8, %v989_v10  ;;  %v2562_v63 = vcombine.low %v981_v8, %v989_v10  ;;  %v1803_v8 = vld [vmem:[#allocation2 + $0xc0] sm:$0xff] }
 0x6c5   :  { %v936_v32 = vpop.xlane.xlu0 %935 }
 0x6c6   :  { %v944_v30 = vmul.f32 0.03125, %v936_v32  ;;  %v933_v33 = vpop.xlane.xlu1 %932  ;;  %v984_v32 = vld [vmem:[%s3811_s6 + $0x38] sm:$0xff] }
 0x6c7   :  { %v943_v34 = vmul.f32 0.03125, %v933_v33 }
 0x6c8   :  { %v948_v35 = vadd.f32 1e-05, %v944_v30  ;;  %v992_v30 = vld [vmem:[%s3811_s6 + $0x78] sm:$0xff] }
 0x6c9   :  { %v947_v36 = vadd.f32 1e-05, %v943_v34  ;;  %v2580_v34 = vcombine.low %v998_v23, %v1006_v24 }
 0x6ca   :  { %2976 = vrsqrt.f32 %v948_v35  ;;  %v2567_v35 = vcombine.high %v983_v27, %v991_v31 }
 0x6cb   :  { %2978 = vrsqrt.f32 %v947_v36  ;;  %v2569_v36 = vcombine.high %v984_v32, %v992_v30 }
 0x6cd   :  { %v939_v37 = vpop.xlane.xlu1 %938 }
 0x6ce   :  { %v945_v44 = vmul.f32 0.03125, %v939_v37  ;;  %v999_v37 = vld [vmem:[%s3811_s6 + $0xb0] sm:$0xff] }
 0x6d0   :  { %v949_v41 = vadd.f32 1e-05, %v945_v44  ;;  %v1007_v44 = vld [vmem:[%s3811_s6 + $0xf0] sm:$0xff] }
 0x6d1   :  { %v942_v47 = vpop.xlane.xlu0 %941 }
 0x6d2   :  { %2980 = vrsqrt.f32 %v949_v41  ;;  %v946_v2 = vmul.f32 0.03125, %v942_v47  ;;  %v1000_v41 = vld [vmem:[%s3811_s6 + $0xb8] sm:$0xff] }
 0x6d3   :  { %v1008_v47 = vld [vmem:[%s3811_s6 + $0xf8] sm:$0xff] }
 0x6d4   :  { %v2977_v48 = vpop.eup %2976  ;;  %v950_v49 = vadd.f32 1e-05, %v946_v2  ;;  %v2566_v2 = vcombine.low %v983_v27, %v991_v31 }
 0x6d5   :  { %v2979_v38 = vpop.eup %2978  ;;  %v956_v6 = vmul.f32 %v2977_v48, %v3361_v40  ;;  %v1004_v40 = vld [vmem:[%s3811_s6 + $0xd8] sm:$0xff]  ;;  %v1779_v48 = vld [vmem:[#allocation2] sm:$0xff] }
 0x6d6   :  { %v955_v3 = vmul.f32 %v2979_v38, %v3363_v52  ;;  %2982 = vrsqrt.f32 %v950_v49  ;;  %v2577_v9 = vcombine.high %v996_v60, %v1004_v40  ;;  %v2576_v12 = vcombine.low %v996_v60, %v1004_v40 }
 0x6d7   :  { %v964_v51 = vmul.f32 %v962_v5, %v956_v6  ;;  %v2583_v49 = vcombine.high %v999_v37, %v1007_v44  ;;  %v2585_v38 = vcombine.high %v1000_v41, %v1008_v47  ;;  %v1780_v6 = vld [vmem:[#allocation2 + $0x8] sm:$0xff] }
 0x6d8   :  { %v963_v43 = vmul.f32 %v962_v5, %v955_v3  ;;  %v1788_v3 = vld [vmem:[#allocation2 + $0x48] sm:$0xff] }
 0x6d9   :  { %v3431_v53 = vadd.f32 %v970_v50, %v964_v51  ;;  %v2582_v51 = vcombine.low %v999_v37, %v1007_v44  ;;  %v2605_v40 = vcombine.low %v1780_v6, %v1788_v3 }
 0x6da   :  { %v3436_v58 = vadd.f32 %v970_v50, %v963_v43  ;;  %v2584_v43 = vcombine.low %v1000_v41, %v1008_v47 }
 0x6dc   :  { %v2981_v52 = vpop.eup %2980  ;;  %v3449_v7 = vpack.c.bf16 %v3431_v53, %v3436_v58 }
 0x6dd   :  { %v957_v55 = vmul.f32 %v2981_v52, %v3371_v54  ;;  %v2574_v54 = vcombine.low %v995_v57, %v1003_v42  ;;  %v2606_v42 = vcombine.high %v1780_v6, %v1788_v3  ;;  %v1795_v52 = vld [vmem:[#allocation2 + $0x80] sm:$0xff] }
 0x6de   :  { %2586 = vmatmul.mubr.msk.bf16.vlgmr.msra.gmra.mrb[12].mxu0 %vm246_vm0, %v3449_v7  ;;  %2588 = vmatmul.mubr.msk.bf16.vlgmr.msra.gmra.mrb[12].mxu1 %vm246_vm0, %v3449_v7  ;;  %v2619_v10 = vcombine.low %v1795_v52, %v1803_v8 }
 0x6df   :  { %1366 = vmatpush1.bf16.msra.mxu0 %v2558_v25  ;;  %1419 = vmatpush1.bf16.msra.mxu1 %v2560_v29  ;;  %v965_v15 = vmul.f32 %v962_v5, %v957_v55  ;;  %v2564_v25 = vcombine.low %v982_v11, %v990_v1  ;;  %v2581_v29 = vcombine.high %v998_v23, %v1006_v24  ;;  %v1796_v55 = vld [vmem:[#allocation2 + $0x88] sm:$0xff]  ;;  %v1789_v1 = vld [vmem:[#allocation2 + $0x50] sm:$0xff] }
 0x6e0   :  { %v2983_v0 = vpop.eup %2982  ;;  %1301 = vmatprep.mubr.bf16.mxu0 %v3035_v22  ;;  %1354 = vmatprep.mubr.bf16.mxu1 %v3035_v22 }
 0x6e1   :  { %v958_v16 = vmul.f32 %v2983_v0, %v3375_v4  ;;  %1367 = vmatprep.subr.bf16.mxu0 %v2575_v56  ;;  %1420 = vmatprep.subr.bf16.mxu1 %v2577_v9  ;;  %v3471_v62 = vadd.f32 %v970_v50, %v965_v15  ;;  %v997_v4 = vld [vmem:[%s3811_s6 + $0xa0] sm:$0xff]  ;;  %v2620_v56 = vcombine.high %v1795_v52, %v1803_v8  ;;  %v1804_v9 = vld [vmem:[#allocation2 + $0xc8] sm:$0xff]  ;;  %v1790_v0 = vld [vmem:[#allocation2 + $0x58] sm:$0xff]  ;;  %v3585_v52 = vsub.s32 6, %v3236_v59 }
 0x6e2   :  { %v2579_v28 = vcombine.high %v997_v4, %v1005_v21  ;;  %v2578_v33 = vcombine.low %v997_v4, %v1005_v21  ;;  %v2621_v11 = vcombine.low %v1796_v55, %v1804_v9 }
 0x6e3   :  { %v966_v17 = vmul.f32 %v962_v5, %v958_v16  ;;  %1368 = vmatpush1.bf16.msra.mxu0 %v2574_v54  ;;  %1421 = vmatpush1.bf16.msra.mxu1 %v2576_v12  ;;  %v2568_v5 = vcombine.low %v984_v32, %v992_v30  ;;  %v1782_v54 = vld [vmem:[#allocation2 + $0x18] sm:$0xff]  ;;  %v3558_v16 = vld [vmem:[%s3812_s7] sm:$0xff] }
 0x6e4   :  { %1471 = vmatprep.subr.bf16.mxu0 %v2563_v13  ;;  %1524 = vmatprep.subr.bf16.mxu1 %v2565_v14  ;;  %v2609_v14 = vcombine.low %v1782_v54, %v1790_v0  ;;  %v2610_v15 = vcombine.high %v1782_v54, %v1790_v0  ;;  %v3566_v4 = vrot.slane %v3558_v16, %v3244_v61 }
 0x6e5   :  { %v3473_v18 = vadd.f32 %v970_v50, %v966_v17  ;;  %v1787_v50 = vld [vmem:[#allocation2 + $0x40] sm:$0xff]  ;;  %v1016_v17 = vrot.slane %v3558_v16, %v3271_v19  ;;  %v3570_v21 = vrot.slane %v3558_v16, %v3349_v26  ;;  %v3596_v54 = vrot.slane %v3558_v16, %v3420_v45 }
 0x6e6   :  { %v2604_v57 = vcombine.high %v1779_v48, %v1787_v50  ;;  %v2603_v60 = vcombine.low %v1779_v48, %v1787_v50  ;;  %v3576_v48 = vld [vmem:[#allocation2 + $0x90] sm:$0xff] }
 0x6e7   :  { %v3477_v20 = vpack.c.bf16 %v3473_v18, %v3471_v62 }
 0x6e9   :  { %2587 = vmatmul.mubr.msk.bf16.gmra.mrb[16].mxu0 %vm246_vm0, %v3477_v20  ;;  %2589 = vmatmul.mubr.msk.bf16.gmra.mrb[16].mxu1 %vm246_vm0, %v3477_v20 }
 0x6ea   :  { %1397 = vmatprep.mubr.bf16.mxu0 %v3035_v22  ;;  %1450 = vmatprep.mubr.bf16.mxu1 %v3035_v22 }
 0x6f1   :  { %2590 = vmatmul.mubr.msk.bf16.vlgmr.msra.gmra.mrb[20].mxu0 %vm246_vm0, %v3449_v7  ;;  %2592 = vmatmul.mubr.msk.bf16.vlgmr.msra.gmra.mrb[20].mxu1 %vm246_vm0, %v3449_v7 }
 0x6f2   :  { %1472 = vmatpush1.bf16.msra.mxu0 %v2562_v63  ;;  %1525 = vmatpush1.bf16.msra.mxu1 %v2564_v25 }
 0x6f3   :  { %1407 = vmatprep.mubr.bf16.mxu0 %v3035_v22  ;;  %1460 = vmatprep.mubr.bf16.mxu1 %v3035_v22 }
 0x6f4   :  { %1473 = vmatprep.subr.bf16.mxu0 %v2579_v28  ;;  %1526 = vmatprep.subr.bf16.mxu1 %v2581_v29 }
 0x6f6   :  { %1474 = vmatpush1.bf16.msra.mxu0 %v2578_v33  ;;  %1527 = vmatpush1.bf16.msra.mxu1 %v2580_v34 }
 0x6f7   :  { %1577 = vmatprep.subr.bf16.mxu0 %v2567_v35  ;;  %1630 = vmatprep.subr.bf16.mxu1 %v2569_v36 }
 0x6f9   :  { %2591 = vmatmul.mubr.msk.bf16.gmra.mrb[24].mxu0 %vm246_vm0, %v3477_v20  ;;  %2593 = vmatmul.mubr.msk.bf16.gmra.mrb[24].mxu1 %vm246_vm0, %v3477_v20 }
 0x6fa   :  { %1503 = vmatprep.mubr.bf16.mxu0 %v3035_v22  ;;  %1556 = vmatprep.mubr.bf16.mxu1 %v3035_v22 }
 0x701   :  { %2594 = vmatmul.mubr.msk.bf16.vlgmr.msra.gmra.mrb[28].mxu0 %vm246_vm0, %v3449_v7  ;;  %2596 = vmatmul.mubr.msk.bf16.vlgmr.msra.gmra.mrb[28].mxu1 %vm246_vm0, %v3449_v7 }
 0x702   :  { %1578 = vmatpush1.bf16.msra.mxu0 %v2566_v2  ;;  %1631 = vmatpush1.bf16.msra.mxu1 %v2568_v5 }
 0x703   :  { %1513 = vmatprep.mubr.bf16.mxu0 %v3035_v22  ;;  %1566 = vmatprep.mubr.bf16.mxu1 %v3035_v22 }
 0x704   :  { %1579 = vmatprep.subr.bf16.mxu0 %v2583_v49  ;;  %1632 = vmatprep.subr.bf16.mxu1 %v2585_v38  ;;  %v3578_v49 = vld [vmem:[#allocation2 + $0xd0] sm:$0xff] }
 0x705   :  { %v2624_v8 = vcombine.high %v3576_v48, %v3578_v49 }
 0x706   :  { %1580 = vmatpush1.bf16.msra.mxu0 %v2582_v51  ;;  %1633 = vmatpush1.bf16.msra.mxu1 %v2584_v43  ;;  %v3580_v51 = vld [vmem:[#allocation2 + $0x98] sm:$0xff] }
 0x707   :  { %1975 = vmatprep.subr.bf16.mxu0 %v2604_v57  ;;  %2024 = vmatprep.subr.bf16.mxu1 %v2606_v42  ;;  %v3582_v43 = vld [vmem:[#allocation2 + $0xd8] sm:$0xff] }
 0x709   :  { %2595 = vmatmul.mubr.msk.bf16.gmra.mrb[32].mxu0 %vm246_vm0, %v3477_v20  ;;  %2597 = vmatmul.mubr.msk.bf16.gmra.mrb[32].mxu1 %vm246_vm0, %v3477_v20 }
 0x70a   :  { %1609 = vmatprep.mubr.bf16.mxu0 %v3035_v22  ;;  %1662 = vmatprep.mubr.bf16.mxu1 %v3035_v22 }
 0x711   :  { %2598 = vmatmul.mubr.msk.bf16.vlgmr.msra.gmra.mrb[36].mxu0 %vm246_vm0, %v3449_v7  ;;  %2600 = vmatmul.mubr.msk.bf16.vlgmr.msra.gmra.mrb[36].mxu1 %vm246_vm0, %v3449_v7  ;;  %v2622_v7 = vcombine.high %v1796_v55, %v1804_v9  ;;  %v2626_v55 = vcombine.high %v3580_v51, %v3582_v43 }
 0x712   :  { %1619 = vmatprep.mubr.bf16.mxu0 %v3035_v22  ;;  %1672 = vmatprep.mubr.bf16.mxu1 %v3035_v22  ;;  %v1781_v22 = vld [vmem:[#allocation2 + $0x10] sm:$0xff] }
 0x713   :  { %1976 = vmatpush1.bf16.xpose.msra.mxu0 %v2603_v60  ;;  %2025 = vmatpush1.bf16.xpose.msra.mxu1 %v2605_v40  ;;  %v2608_v12 = vcombine.high %v1781_v22, %v1789_v1  ;;  %v2607_v13 = vcombine.low %v1781_v22, %v1789_v1 }
 0x714   :  { %1977 = vmatprep.subr.bf16.mxu0 %v2620_v56  ;;  %2026 = vmatprep.subr.bf16.mxu1 %v2622_v7  ;;  %v3592_v56 = vsub.s32 7, %v3236_v59 }
 0x719   :  { %2599 = vmatmul.mubr.msk.bf16.gmra.mrb[40].mxu0 %vm246_vm0, %v3477_v20  ;;  %2601 = vmatmul.mubr.msk.bf16.gmra.mrb[40].mxu1 %vm246_vm0, %v3477_v20  ;;  %v1024_v20 = vrot.slane %v3558_v16, %v3280_v39 }
 0x71b   :  { %1978 = vmatpush1.bf16.xpose.msra.mxu0 %v2619_v10  ;;  %2027 = vmatpush1.bf16.xpose.msra.mxu1 %v2621_v11 }
 0x71c   :  { %2073 = vmatprep.subr.bf16.mxu0 %v2608_v12  ;;  %2122 = vmatprep.subr.bf16.mxu1 %v2610_v15 }
 0x7b1   :  { %v1293_v23 = vpop.f32.mrb[12].mxu0  ;;  %v1346_v24 = vpop.f32.mrb[12].mxu1 }
 0x7b2   :  { %v1294_v63 = vadd.f32 %v1293_v23, %v1016_v17  ;;  %v1347_v25 = vadd.f32 %v1346_v24, %v1024_v20  ;;  %v1295_v27 = vpop.f32.mrb[13].mxu0  ;;  %v1348_v28 = vpop.f32.mrb[13].mxu1  ;;  %v3602_v23 = vrot.slane %v3558_v16, %v3585_v52 }
 0x7b3   :  { %v1296_v29 = vadd.f32 %v1295_v27, %v3566_v4  ;;  %v1349_v31 = vadd.f32 %v1348_v28, %v3570_v21  ;;  %v1297_v32 = vpop.f32.mrb[14].mxu0  ;;  %v1350_v30 = vpop.f32.mrb[14].mxu1  ;;  %v3610_v27 = vrot.slane %v3558_v16, %v3592_v56 }
 0x7b4   :  { %v1298_v33 = vadd.f32 %v1297_v32, %v1016_v17  ;;  %v1351_v34 = vadd.f32 %v1350_v30, %v1024_v20  ;;  %v1299_v35 = vpop.f32.mrb[15].mxu0  ;;  %v1352_v36 = vpop.f32.mrb[15].mxu1  ;;  %v1683_v41 = vmax.f32 %v1294_v63, 0.0  ;;  %v1685_v47 = vmax.f32 %v1347_v25, 0.0  ;;  %v3620_v32 = vld [vmem:[#allocation2 + $0x60] sm:$0xff] }
 0x7b5   :  { %v1300_v37 = vadd.f32 %v1299_v35, %v3566_v4  ;;  %v1353_v44 = vadd.f32 %v1352_v36, %v3570_v21  ;;  %v1684_v38 = vmax.f32 %v1296_v29, 0.0  ;;  %v1686_v50 = vmax.f32 %v1349_v31, 0.0  ;;  %v3624_v36 = vld [vmem:[#allocation2 + $0x68] sm:$0xff] }
 0x7b6   :  { %v1699_v2 = vmax.f32 %v1298_v33, 0.0  ;;  %v1701_v5 = vmax.f32 %v1351_v34, 0.0  ;;  %v3606_v25 = vrot.slane %v3558_v16, %v3423_v46  ;;  %v2623_v31 = vcombine.low %v3576_v48, %v3578_v49  ;;  %v3622_v16 = vld [vmem:[#allocation2 + $0x28] sm:$0xff] }
 0x7b7   :  { %v1700_v6 = vmax.f32 %v1300_v37, 0.0  ;;  %v1702_v3 = vmax.f32 %v1353_v44, 0.0 }
 0x7b8   :  { %v1747_v57 = vpack.c.bf16 %v1699_v2, %v1683_v41  ;;  %v1749_v42 = vpack.c.bf16 %v1701_v5, %v1685_v47 }
 0x7b9   :  { %v1748_v60 = vpack.c.bf16 %v1700_v6, %v1684_v38  ;;  %v1750_v40 = vpack.c.bf16 %v1702_v3, %v1686_v50  ;;  %v2614_v50 = vcombine.high %v3622_v16, %v3624_v36 }
 0x7bb   :  { %2007 = vmatprep.mubr.bf16.mxu0 %v1748_v60  ;;  %2056 = vmatprep.mubr.bf16.mxu1 %v1750_v40 }
 0x7bc   :  { %v1303_v9 = vpop.f32.mrb[16].mxu0  ;;  %v1356_v10 = vpop.f32.mrb[16].mxu1  ;;  %2008 = vmatmul.mubr.bf16.vlgmr.msra.gmra.mrb[44].mxu0 %v1747_v57  ;;  %2057 = vmatmul.mubr.bf16.vlgmr.msra.gmra.mrb[44].mxu1 %v1749_v42 }
 0x7bd   :  { %v1304_v11 = vadd.f32 %v1303_v9, %v1016_v17  ;;  %v1357_v7 = vadd.f32 %v1356_v10, %v1024_v20  ;;  %v1305_v22 = vpop.f32.mrb[17].mxu0  ;;  %v1358_v1 = vpop.f32.mrb[17].mxu1  ;;  %2074 = vmatpush1.bf16.xpose.msra.mxu0 %v2607_v13  ;;  %2123 = vmatpush1.bf16.xpose.msra.mxu1 %v2609_v14 }
 0x7be   :  { %v1306_v12 = vadd.f32 %v1305_v22, %v3566_v4  ;;  %v1359_v0 = vadd.f32 %v1358_v1, %v3570_v21  ;;  %v1307_v59 = vpop.f32.mrb[18].mxu0  ;;  %v1360_v15 = vpop.f32.mrb[18].mxu1  ;;  %2075 = vmatprep.subr.bf16.mxu0 %v2624_v8  ;;  %2124 = vmatprep.subr.bf16.mxu1 %v2626_v55  ;;  %v3641_v22 = vld [vmem:[%s3812_s7 + $0x8] sm:$0xff] }
 0x7bf   :  { %v1308_v24 = vadd.f32 %v1307_v59, %v1016_v17  ;;  %v1361_v63 = vadd.f32 %v1360_v15, %v1024_v20  ;;  %v1309_v13 = vpop.f32.mrb[19].mxu0  ;;  %v1362_v14 = vpop.f32.mrb[19].mxu1  ;;  %v2625_v17 = vcombine.low %v3580_v51, %v3582_v43  ;;  %v3618_v20 = vld [vmem:[#allocation2 + $0x20] sm:$0xff]  ;;  %v1715_v30 = vmax.f32 %v1304_v11, 0.0 }
 0x7c0   :  { %v1310_v28 = vadd.f32 %v1309_v13, %v3566_v4  ;;  %v1363_v29 = vadd.f32 %v1362_v14, %v3570_v21  ;;  %v1717_v33 = vmax.f32 %v1357_v7, 0.0  ;;  %v1716_v4 = vmax.f32 %v1306_v12, 0.0  ;;  %v3643_v15 = vld [vmem:[#allocation2 + $0xa0] sm:$0xff] }
 0x7c1   :  { %v1731_v34 = vmax.f32 %v1308_v24, 0.0  ;;  %v1733_v35 = vmax.f32 %v1361_v63, 0.0  ;;  %v1718_v21 = vmax.f32 %v1359_v0, 0.0  ;;  %v2612_v38 = vcombine.high %v3618_v20, %v3620_v32  ;;  %v3645_v24 = vld [vmem:[#allocation2 + $0xe0] sm:$0xff] }
 0x7c2   :  { %v1732_v37 = vmax.f32 %v1310_v28, 0.0  ;;  %v1734_v44 = vmax.f32 %v1363_v29, 0.0  ;;  %v3647_v29 = vld [vmem:[#allocation2 + $0xa8] sm:$0xff] }
 0x7c3   :  { %v1763_v41 = vpack.c.bf16 %v1731_v34, %v1715_v30  ;;  %v1765_v47 = vpack.c.bf16 %v1733_v35, %v1717_v33  ;;  %v2611_v33 = vcombine.low %v3618_v20, %v3620_v32  ;;  %v2628_v20 = vcombine.high %v3643_v15, %v3645_v24 }
 0x7c4   :  { %v1764_v2 = vpack.c.bf16 %v1732_v37, %v1716_v4  ;;  %v1766_v5 = vpack.c.bf16 %v1734_v44, %v1718_v21  ;;  %v1399_v48 = vpop.f32.mrb[20].mxu0  ;;  %v1452_v49 = vpop.f32.mrb[20].mxu1  ;;  %v2613_v37 = vcombine.low %v3622_v16, %v3624_v36  ;;  %v3657_v44 = vrot.slane %v3641_v22, %v3271_v19 }
 0x7c5   :  { %v1400_v6 = vadd.f32 %v1399_v48, %v3596_v54  ;;  %v1453_v3 = vadd.f32 %v1452_v49, %v3602_v23  ;;  %v1401_v51 = vpop.f32.mrb[21].mxu0  ;;  %v1454_v43 = vpop.f32.mrb[21].mxu1  ;;  %2076 = vmatpush1.bf16.xpose.msra.mxu0 %v2623_v31  ;;  %2125 = vmatpush1.bf16.xpose.msra.mxu1 %v2625_v17  ;;  %v3649_v31 = vld [vmem:[#allocation2 + $0xe8] sm:$0xff] }
 0x7c6   :  { %v1402_v57 = vadd.f32 %v1401_v51, %v3606_v25  ;;  %v1455_v42 = vadd.f32 %v1454_v43, %v3610_v27  ;;  %v1403_v60 = vpop.f32.mrb[22].mxu0  ;;  %v1456_v40 = vpop.f32.mrb[22].mxu1  ;;  %2015 = vmatprep.mubr.bf16.mxu0 %v1764_v2  ;;  %2064 = vmatprep.mubr.bf16.mxu1 %v1766_v5  ;;  %v2630_v32 = vcombine.high %v3647_v29, %v3649_v31 }
 0x7c7   :  { %v1404_v8 = vadd.f32 %v1403_v60, %v3596_v54  ;;  %v1457_v55 = vadd.f32 %v1456_v40, %v3602_v23  ;;  %v1405_v9 = vpop.f32.mrb[23].mxu0  ;;  %v1458_v10 = vpop.f32.mrb[23].mxu1  ;;  %2016 = vmatmul.mubr.bf16.gmra.mrb[48].mxu0 %v1763_v41  ;;  %2065 = vmatmul.mubr.bf16.gmra.mrb[48].mxu1 %v1765_v47  ;;  %v1687_v1 = vmax.f32 %v1400_v6, 0.0  ;;  %v1689_v12 = vmax.f32 %v1453_v3, 0.0 }
 0x7c8   :  { %v1406_v11 = vadd.f32 %v1405_v9, %v3606_v25  ;;  %v1459_v7 = vadd.f32 %v1458_v10, %v3610_v27  ;;  %2171 = vmatprep.subr.bf16.mxu0 %v2612_v38  ;;  %2220 = vmatprep.subr.bf16.mxu1 %v2614_v50  ;;  %v1688_v63 = vmax.f32 %v1402_v57, 0.0  ;;  %v1690_v13 = vmax.f32 %v1455_v42, 0.0  ;;  %v3685_v9 = vld [vmem:[#allocation2 + $0x70] sm:$0xff] }
 0x7c9   :  { %v1703_v0 = vmax.f32 %v1404_v8, 0.0  ;;  %v1705_v59 = vmax.f32 %v1457_v55, 0.0  ;;  %v3669_v38 = vrot.slane %v3641_v22, %v3280_v39  ;;  %v3675_v43 = vrot.slane %v3641_v22, %v3244_v61  ;;  %v3683_v55 = vld [vmem:[#allocation2 + $0x30] sm:$0xff] }
 0x7ca   :  { %v1704_v14 = vmax.f32 %v1406_v11, 0.0  ;;  %v1706_v28 = vmax.f32 %v1459_v7, 0.0  ;;  %v3681_v60 = vrot.slane %v3641_v22, %v3349_v26  ;;  %v3687_v7 = vld [vmem:[#allocation2 + $0x38] sm:$0xff] }
 0x7cb   :  { %v1751_v17 = vpack.c.bf16 %v1703_v0, %v1687_v1  ;;  %v1753_v30 = vpack.c.bf16 %v1705_v59, %v1689_v12  ;;  %v3689_v1 = vld [vmem:[#allocation2 + $0x78] sm:$0xff] }
 0x7cc   :  { %v1752_v34 = vpack.c.bf16 %v1704_v14, %v1688_v63  ;;  %v1754_v35 = vpack.c.bf16 %v1706_v28, %v1690_v13  ;;  %v1409_v4 = vpop.f32.mrb[24].mxu0  ;;  %v1462_v21 = vpop.f32.mrb[24].mxu1  ;;  %v2627_v14 = vcombine.low %v3643_v15, %v3645_v24  ;;  %v2629_v28 = vcombine.low %v3647_v29, %v3649_v31 }
 0x7cd   :  { %v1410_v41 = vadd.f32 %v1409_v4, %v3596_v54  ;;  %v1463_v47 = vadd.f32 %v1462_v21, %v3602_v23  ;;  %v1411_v2 = vpop.f32.mrb[25].mxu0  ;;  %v1464_v5 = vpop.f32.mrb[25].mxu1  ;;  %v2618_v4 = vcombine.high %v3687_v7, %v3689_v1 }
 0x7ce   :  { %v1412_v48 = vadd.f32 %v1411_v2, %v3606_v25  ;;  %v1465_v16 = vadd.f32 %v1464_v5, %v3610_v27  ;;  %v1413_v36 = vpop.f32.mrb[26].mxu0  ;;  %v1466_v49 = vpop.f32.mrb[26].mxu1  ;;  %2105 = vmatprep.mubr.bf16.mxu0 %v1752_v34  ;;  %2154 = vmatprep.mubr.bf16.mxu1 %v1754_v35  ;;  %v2616_v35 = vcombine.high %v3683_v55, %v3685_v9 }
 0x7cf   :  { %v1414_v50 = vadd.f32 %v1413_v36, %v3596_v54  ;;  %v1467_v6 = vadd.f32 %v1466_v49, %v3602_v23  ;;  %v1415_v3 = vpop.f32.mrb[27].mxu0  ;;  %v1468_v51 = vpop.f32.mrb[27].mxu1  ;;  %2106 = vmatmul.mubr.bf16.vlgmr.msra.gmra.mrb[52].mxu0 %v1751_v17  ;;  %2155 = vmatmul.mubr.bf16.vlgmr.msra.gmra.mrb[52].mxu1 %v1753_v30  ;;  %v1719_v54 = vmax.f32 %v1410_v41, 0.0  ;;  %v1721_v23 = vmax.f32 %v1463_v47, 0.0  ;;  %v3707_v36 = vld [vmem:[#allocation2 + $0xb0] sm:$0xff] }
 0x7d0   :  { %v1416_v57 = vadd.f32 %v1415_v3, %v3606_v25  ;;  %v1469_v42 = vadd.f32 %v1468_v51, %v3610_v27  ;;  %2172 = vmatpush1.bf16.xpose.msra.mxu0 %v2611_v33  ;;  %2221 = vmatpush1.bf16.xpose.msra.mxu1 %v2613_v37  ;;  %v1720_v10 = vmax.f32 %v1412_v48, 0.0  ;;  %v1722_v25 = vmax.f32 %v1465_v16, 0.0  ;;  %v3709_v49 = vld [vmem:[#allocation2 + $0xf0] sm:$0xff] }
 0x7d1   :  { %v1735_v40 = vmax.f32 %v1414_v50, 0.0  ;;  %v1737_v8 = vmax.f32 %v1467_v6, 0.0  ;;  %2173 = vmatprep.subr.bf16.mxu0 %v2628_v20  ;;  %2222 = vmatprep.subr.bf16.mxu1 %v2630_v32 }
 0x7d2   :  { %v1736_v11 = vmax.f32 %v1416_v57, 0.0  ;;  %v1738_v27 = vmax.f32 %v1469_v42, 0.0  ;;  %v3711_v57 = vld [vmem:[#allocation2 + $0xb8] sm:$0xff] }
 0x7d3   :  { %v1767_v26 = vpack.c.bf16 %v1735_v40, %v1719_v54  ;;  %v1769_v12 = vpack.c.bf16 %v1737_v8, %v1721_v23  ;;  %v3713_v42 = vld [vmem:[#allocation2 + $0xf8] sm:$0xff]  ;;  %v2615_v40 = vcombine.low %v3683_v55, %v3685_v9  ;;  %v2632_v55 = vcombine.high %v3707_v36, %v3709_v49 }
 0x7d4   :  { %v1768_v0 = vpack.c.bf16 %v1736_v11, %v1720_v10  ;;  %v1770_v59 = vpack.c.bf16 %v1738_v27, %v1722_v25  ;;  %v1505_v63 = vpop.f32.mrb[28].mxu0  ;;  %v1558_v13 = vpop.f32.mrb[28].mxu1  ;;  %v2617_v27 = vcombine.low %v3687_v7, %v3689_v1  ;;  %v2634_v9 = vcombine.high %v3711_v57, %v3713_v42 }
 0x7d5   :  { %v1506_v17 = vadd.f32 %v1505_v63, %v3657_v44  ;;  %v1559_v30 = vadd.f32 %v1558_v13, %v3669_v38  ;;  %v1507_v33 = vpop.f32.mrb[29].mxu0  ;;  %v1560_v34 = vpop.f32.mrb[29].mxu1 }
 0x7d6   :  { %v1508_v21 = vadd.f32 %v1507_v33, %v3675_v43  ;;  %v1561_v37 = vadd.f32 %v1560_v34, %v3681_v60  ;;  %v1509_v15 = vpop.f32.mrb[30].mxu0  ;;  %v1562_v24 = vpop.f32.mrb[30].mxu1  ;;  %2113 = vmatprep.mubr.bf16.mxu0 %v1768_v0  ;;  %2162 = vmatprep.mubr.bf16.mxu1 %v1770_v59  ;;  %v3739_v34 = vrot.slane %v3641_v22, %v3423_v46 }
 0x7d7   :  { %v1510_v29 = vadd.f32 %v1509_v15, %v3657_v44  ;;  %v1563_v31 = vadd.f32 %v1562_v24, %v3669_v38  ;;  %v1511_v41 = vpop.f32.mrb[31].mxu0  ;;  %v1564_v47 = vpop.f32.mrb[31].mxu1  ;;  %2114 = vmatmul.mubr.bf16.gmra.mrb[56].mxu0 %v1767_v26  ;;  %2163 = vmatmul.mubr.bf16.gmra.mrb[56].mxu1 %v1769_v12  ;;  %v1691_v20 = vmax.f32 %v1506_v17, 0.0  ;;  %v1693_v32 = vmax.f32 %v1559_v30, 0.0 }
 0x7d8   :  { %v1512_v2 = vadd.f32 %v1511_v41, %v3675_v43  ;;  %v1565_v5 = vadd.f32 %v1564_v47, %v3681_v60  ;;  %2174 = vmatpush1.bf16.xpose.msra.mxu0 %v2627_v14  ;;  %2223 = vmatpush1.bf16.xpose.msra.mxu1 %v2629_v28  ;;  %v1692_v50 = vmax.f32 %v1508_v21, 0.0  ;;  %v1694_v6 = vmax.f32 %v1561_v37, 0.0 }
 0x7d9   :  { %v1707_v48 = vmax.f32 %v1510_v29, 0.0  ;;  %v1709_v16 = vmax.f32 %v1563_v31, 0.0  ;;  %2269 = vmatprep.subr.bf16.mxu0 %v2616_v35  ;;  %2318 = vmatprep.subr.bf16.mxu1 %v2618_v4  ;;  %v3721_v26 = vrot.slane %v3641_v22, %v3420_v45  ;;  %v3733_v45 = vrot.slane %v3641_v22, %v3585_v52 }
 0x7da   :  { %v1708_v3 = vmax.f32 %v1512_v2, 0.0  ;;  %v1710_v51 = vmax.f32 %v1565_v5, 0.0  ;;  %v3745_v21 = vrot.slane %v3641_v22, %v3592_v56  ;;  %v2631_v22 = vcombine.low %v3707_v36, %v3709_v49 }
 0x7db   :  { %v1755_v54 = vpack.c.bf16 %v1707_v48, %v1691_v20  ;;  %v1757_v23 = vpack.c.bf16 %v1709_v16, %v1693_v32  ;;  %v2633_v20 = vcombine.low %v3711_v57, %v3713_v42 }
 0x7dc   :  { %v1756_v8 = vpack.c.bf16 %v1708_v3, %v1692_v50  ;;  %v1758_v10 = vpack.c.bf16 %v1710_v51, %v1694_v6  ;;  %v1515_v25 = vpop.f32.mrb[32].mxu0  ;;  %v1568_v11 = vpop.f32.mrb[32].mxu1 }
 0x7dd   :  { %v1516_v12 = vadd.f32 %v1515_v25, %v3657_v44  ;;  %v1569_v0 = vadd.f32 %v1568_v11, %v3669_v38  ;;  %v1517_v59 = vpop.f32.mrb[33].mxu0  ;;  %v1570_v63 = vpop.f32.mrb[33].mxu1 }
 0x7de   :  { %v1518_v13 = vadd.f32 %v1517_v59, %v3675_v43  ;;  %v1571_v7 = vadd.f32 %v1570_v63, %v3681_v60  ;;  %v1519_v1 = vpop.f32.mrb[34].mxu0  ;;  %v1572_v14 = vpop.f32.mrb[34].mxu1  ;;  %2203 = vmatprep.mubr.bf16.mxu0 %v1756_v8  ;;  %2252 = vmatprep.mubr.bf16.mxu1 %v1758_v10 }
 0x7df   :  { %v1520_v28 = vadd.f32 %v1519_v1, %v3657_v44  ;;  %v1573_v17 = vadd.f32 %v1572_v14, %v3669_v38  ;;  %v1521_v30 = vpop.f32.mrb[35].mxu0  ;;  %v1574_v33 = vpop.f32.mrb[35].mxu1  ;;  %2204 = vmatmul.mubr.bf16.vlgmr.msra.gmra.mrb[60].mxu0 %v1755_v54  ;;  %2253 = vmatmul.mubr.bf16.vlgmr.msra.gmra.mrb[60].mxu1 %v1757_v23  ;;  %v1723_v44 = vmax.f32 %v1516_v12, 0.0  ;;  %v1725_v38 = vmax.f32 %v1569_v0, 0.0 }
 0x7e0   :  { %v1522_v35 = vadd.f32 %v1521_v30, %v3675_v43  ;;  %v1575_v4 = vadd.f32 %v1574_v33, %v3681_v60  ;;  %2270 = vmatpush1.bf16.xpose.msra.mxu0 %v2615_v40  ;;  %2319 = vmatpush1.bf16.xpose.msra.mxu1 %v2617_v27  ;;  %v1724_v24 = vmax.f32 %v1518_v13, 0.0  ;;  %v1726_v29 = vmax.f32 %v1571_v7, 0.0 }
 0x7e1   :  { %v1739_v37 = vmax.f32 %v1520_v28, 0.0  ;;  %v1741_v15 = vmax.f32 %v1573_v17, 0.0  ;;  %2271 = vmatprep.subr.bf16.mxu0 %v2632_v55  ;;  %2320 = vmatprep.subr.bf16.mxu1 %v2634_v9 }
 0x7e2   :  { %v1740_v46 = vmax.f32 %v1522_v35, 0.0  ;;  %v1742_v31 = vmax.f32 %v1575_v4, 0.0 }
 0x7e3   :  { %v1771_v41 = vpack.c.bf16 %v1739_v37, %v1723_v44  ;;  %v1773_v43 = vpack.c.bf16 %v1741_v15, %v1725_v38 }
 0x7e4   :  { %v1772_v47 = vpack.c.bf16 %v1740_v46, %v1724_v24  ;;  %v1774_v60 = vpack.c.bf16 %v1742_v31, %v1726_v29  ;;  %v1611_v2 = vpop.f32.mrb[36].mxu0  ;;  %v1664_v5 = vpop.f32.mrb[36].mxu1 }
 0x7e5   :  { %v1612_v32 = vadd.f32 %v1611_v2, %v3721_v26  ;;  %v1665_v48 = vadd.f32 %v1664_v5, %v3733_v45  ;;  %v1613_v16 = vpop.f32.mrb[37].mxu0  ;;  %v1666_v50 = vpop.f32.mrb[37].mxu1 }
 0x7e6   :  { %v1614_v6 = vadd.f32 %v1613_v16, %v3739_v34  ;;  %v1667_v3 = vadd.f32 %v1666_v50, %v3745_v21  ;;  %v1615_v51 = vpop.f32.mrb[38].mxu0  ;;  %v1668_v54 = vpop.f32.mrb[38].mxu1  ;;  %2211 = vmatprep.mubr.bf16.mxu0 %v1772_v47  ;;  %2260 = vmatprep.mubr.bf16.mxu1 %v1774_v60 }
 0x7e7   :  { %v1616_v23 = vadd.f32 %v1615_v51, %v3721_v26  ;;  %v1669_v36 = vadd.f32 %v1668_v54, %v3733_v45  ;;  %v1617_v49 = vpop.f32.mrb[39].mxu0  ;;  %v1670_v57 = vpop.f32.mrb[39].mxu1  ;;  %2212 = vmatmul.mubr.bf16.gmra.mrb[64].mxu0 %v1771_v41  ;;  %2261 = vmatmul.mubr.bf16.gmra.mrb[64].mxu1 %v1773_v43  ;;  %v1695_v8 = vmax.f32 %v1612_v32, 0.0  ;;  %v1697_v10 = vmax.f32 %v1665_v48, 0.0 }
 0x7e8   :  { %v1618_v42 = vadd.f32 %v1617_v49, %v3739_v34  ;;  %v1671_v40 = vadd.f32 %v1670_v57, %v3745_v21  ;;  %2272 = vmatpush1.bf16.xpose.msra.mxu0 %v2631_v22  ;;  %2321 = vmatpush1.bf16.xpose.msra.mxu1 %v2633_v20  ;;  %v1696_v27 = vmax.f32 %v1614_v6, 0.0  ;;  %v1698_v12 = vmax.f32 %v1667_v3, 0.0 }
 0x7e9   :  { %v1711_v25 = vmax.f32 %v1616_v23, 0.0  ;;  %v1713_v11 = vmax.f32 %v1669_v36, 0.0 }
 0x7ea   :  { %v1712_v0 = vmax.f32 %v1618_v42, 0.0  ;;  %v1714_v59 = vmax.f32 %v1671_v40, 0.0 }
 0x7eb   :  { %v1759_v63 = vpack.c.bf16 %v1711_v25, %v1695_v8  ;;  %v1761_v55 = vpack.c.bf16 %v1713_v11, %v1697_v10 }
 0x7ec   :  { %v1760_v9 = vpack.c.bf16 %v1712_v0, %v1696_v27  ;;  %v1762_v13 = vpack.c.bf16 %v1714_v59, %v1698_v12  ;;  %v1621_v7 = vpop.f32.mrb[40].mxu0  ;;  %v1674_v1 = vpop.f32.mrb[40].mxu1 }
 0x7ed   :  { %v1622_v14 = vadd.f32 %v1621_v7, %v3721_v26  ;;  %v1675_v28 = vadd.f32 %v1674_v1, %v3733_v45  ;;  %v1623_v17 = vpop.f32.mrb[41].mxu0  ;;  %v1676_v30 = vpop.f32.mrb[41].mxu1 }
 0x7ee   :  { %v1624_v33 = vadd.f32 %v1623_v17, %v3739_v34  ;;  %v1677_v35 = vadd.f32 %v1676_v30, %v3745_v21  ;;  %v1625_v4 = vpop.f32.mrb[42].mxu0  ;;  %v1678_v44 = vpop.f32.mrb[42].mxu1  ;;  %2301 = vmatprep.mubr.bf16.mxu0 %v1760_v9  ;;  %2350 = vmatprep.mubr.bf16.mxu1 %v1762_v13 }
 0x7ef   :  { %v1626_v38 = vadd.f32 %v1625_v4, %v3721_v26  ;;  %v1679_v37 = vadd.f32 %v1678_v44, %v3733_v45  ;;  %v1627_v15 = vpop.f32.mrb[43].mxu0  ;;  %v1680_v24 = vpop.f32.mrb[43].mxu1  ;;  %2302 = vmatmul.mubr.bf16.vlgmr.msra.gmra.mrb[68].mxu0 %v1759_v63  ;;  %2351 = vmatmul.mubr.bf16.vlgmr.msra.gmra.mrb[68].mxu1 %v1761_v55  ;;  %v1727_v31 = vmax.f32 %v1622_v14, 0.0  ;;  %v1729_v41 = vmax.f32 %v1675_v28, 0.0 }
 0x7f0   :  { %v1628_v29 = vadd.f32 %v1627_v15, %v3739_v34  ;;  %v1681_v46 = vadd.f32 %v1680_v24, %v3745_v21  ;;  %v1728_v60 = vmax.f32 %v1624_v33, 0.0  ;;  %v1730_v2 = vmax.f32 %v1677_v35, 0.0  ;;  %v2602_v34 = vld [vmem:[%s3810_s5 + $0x8] ss:$0 sm:$0xff] }
 0x7f1   :  { %v1743_v43 = vmax.f32 %v1626_v38, 0.0  ;;  %v1745_v47 = vmax.f32 %v1679_v37, 0.0 }
 0x7f2   :  { %v1744_v5 = vmax.f32 %v1628_v29, 0.0  ;;  %v1746_v22 = vmax.f32 %v1681_v46, 0.0 }
 0x7f3   :  { %v1775_v20 = vpack.c.bf16 %v1743_v43, %v1727_v31  ;;  %v1777_v26 = vpack.c.bf16 %v1745_v47, %v1729_v41 }
 0x7f4   :  { %v1776_v32 = vpack.c.bf16 %v1744_v5, %v1728_v60  ;;  %v1778_v45 = vpack.c.bf16 %v1746_v22, %v1730_v2 }
 0x7f6   :  { %2309 = vmatprep.mubr.bf16.mxu0 %v1776_v32  ;;  %2358 = vmatprep.mubr.bf16.mxu1 %v1778_v45 }
 0x7f7   :  { %2310 = vmatmul.mubr.bf16.gmra.mrb[72].mxu0 %v1775_v20  ;;  %2359 = vmatmul.mubr.bf16.gmra.mrb[72].mxu1 %v1777_v26 }
 0x88f   :  { %v2009_v21 = vpop.f32.mrb[44].mxu0  ;;  %v2058_v48 = vpop.f32.mrb[44].mxu1 }
 0x890   :  { %v2010_v16 = vadd.f32 %v2602_v34, %v2009_v21  ;;  %v2011_v50 = vpop.f32.mrb[45].mxu0  ;;  %v2060_v6 = vpop.f32.mrb[45].mxu1 }
 0x891   :  { %v2012_v3 = vpop.f32.mrb[46].mxu0  ;;  %v2061_v51 = vpop.f32.mrb[46].mxu1 }
 0x892   :  { %v2059_v54 = vadd.f32 %v2058_v48, %v2010_v16  ;;  %v2013_v23 = vadd.f32 %v2602_v34, %v2012_v3  ;;  %v2014_v36 = vpop.f32.mrb[47].mxu0  ;;  %v2063_v49 = vpop.f32.mrb[47].mxu1 }
 0x894   :  { %v2062_v57 = vadd.f32 %v2061_v51, %v2013_v23 }
 0x89a   :  { %v2017_v42 = vpop.f32.mrb[48].mxu0  ;;  %v2066_v40 = vpop.f32.mrb[48].mxu1 }
 0x89b   :  { %v2018_v8 = vadd.f32 %v2602_v34, %v2017_v42  ;;  %v2019_v10 = vpop.f32.mrb[49].mxu0  ;;  %v2068_v25 = vpop.f32.mrb[49].mxu1 }
 0x89c   :  { %v2020_v11 = vpop.f32.mrb[50].mxu0  ;;  %v2069_v27 = vpop.f32.mrb[50].mxu1 }
 0x89d   :  { %v2067_v12 = vadd.f32 %v2066_v40, %v2018_v8  ;;  %v2021_v0 = vadd.f32 %v2602_v34, %v2020_v11  ;;  %v2022_v59 = vpop.f32.mrb[51].mxu0  ;;  %v2071_v63 = vpop.f32.mrb[51].mxu1 }
 0x89f   :  { %v2070_v55 = vadd.f32 %v2069_v27, %v2021_v0 }
 0x8a2   :  { %v2107_v9 = vpop.f32.mrb[52].mxu0  ;;  %v2156_v13 = vpop.f32.mrb[52].mxu1 }
 0x8a3   :  { %v2108_v7 = vadd.f32 %v2107_v9, %v2059_v54  ;;  %v2109_v1 = vpop.f32.mrb[53].mxu0  ;;  %v2158_v14 = vpop.f32.mrb[53].mxu1 }
 0x8a4   :  { %v2110_v28 = vpop.f32.mrb[54].mxu0  ;;  %v2159_v17 = vpop.f32.mrb[54].mxu1 }
 0x8a5   :  { %v2157_v30 = vadd.f32 %v2156_v13, %v2108_v7  ;;  %v2111_v33 = vadd.f32 %v2110_v28, %v2062_v57  ;;  %v2112_v35 = vpop.f32.mrb[55].mxu0  ;;  %v2161_v4 = vpop.f32.mrb[55].mxu1 }
 0x8a7   :  { %v2160_v44 = vadd.f32 %v2159_v17, %v2111_v33 }
 0x8aa   :  { %v2115_v38 = vpop.f32.mrb[56].mxu0  ;;  %v2164_v37 = vpop.f32.mrb[56].mxu1 }
 0x8ab   :  { %v2116_v15 = vadd.f32 %v2115_v38, %v2067_v12  ;;  %v2117_v24 = vpop.f32.mrb[57].mxu0  ;;  %v2166_v29 = vpop.f32.mrb[57].mxu1 }
 0x8ac   :  { %v2118_v46 = vpop.f32.mrb[58].mxu0  ;;  %v2167_v31 = vpop.f32.mrb[58].mxu1 }
 0x8ad   :  { %v2165_v41 = vadd.f32 %v2164_v37, %v2116_v15  ;;  %v2119_v43 = vadd.f32 %v2118_v46, %v2070_v55  ;;  %v2120_v47 = vpop.f32.mrb[59].mxu0  ;;  %v2169_v60 = vpop.f32.mrb[59].mxu1 }
 0x8af   :  { %v2168_v2 = vadd.f32 %v2167_v31, %v2119_v43 }
 0x8b2   :  { %v2205_v5 = vpop.f32.mrb[60].mxu0  ;;  %v2254_v22 = vpop.f32.mrb[60].mxu1 }
 0x8b3   :  { %v2206_v20 = vadd.f32 %v2205_v5, %v2157_v30  ;;  %v2207_v26 = vpop.f32.mrb[61].mxu0  ;;  %v2256_v32 = vpop.f32.mrb[61].mxu1 }
 0x8b4   :  { %v2208_v45 = vpop.f32.mrb[62].mxu0  ;;  %v2257_v34 = vpop.f32.mrb[62].mxu1 }
 0x8b5   :  { %v2255_v21 = vadd.f32 %v2254_v22, %v2206_v20  ;;  %v2209_v48 = vadd.f32 %v2208_v45, %v2160_v44  ;;  %v2210_v16 = vpop.f32.mrb[63].mxu0  ;;  %v2259_v50 = vpop.f32.mrb[63].mxu1 }
 0x8b7   :  { %v2258_v6 = vadd.f32 %v2257_v34, %v2209_v48 }
 0x8ba   :  { %v2213_v3 = vpop.f32.mrb[64].mxu0  ;;  %v2262_v51 = vpop.f32.mrb[64].mxu1 }
 0x8bb   :  { %v2214_v54 = vadd.f32 %v2213_v3, %v2165_v41  ;;  %v2215_v23 = vpop.f32.mrb[65].mxu0  ;;  %v2264_v36 = vpop.f32.mrb[65].mxu1 }
 0x8bc   :  { %v2216_v49 = vpop.f32.mrb[66].mxu0  ;;  %v2265_v57 = vpop.f32.mrb[66].mxu1 }
 0x8bd   :  { %v2263_v42 = vadd.f32 %v2262_v51, %v2214_v54  ;;  %v2217_v40 = vadd.f32 %v2216_v49, %v2168_v2  ;;  %v2218_v8 = vpop.f32.mrb[67].mxu0  ;;  %v2267_v10 = vpop.f32.mrb[67].mxu1 }
 0x8bf   :  { %v2266_v25 = vadd.f32 %v2265_v57, %v2217_v40 }
 0x8c2   :  { %v2303_v11 = vpop.f32.mrb[68].mxu0  ;;  %v2352_v27 = vpop.f32.mrb[68].mxu1 }
 0x8c3   :  { %v2304_v12 = vadd.f32 %v2303_v11, %v2255_v21  ;;  %v2305_v0 = vpop.f32.mrb[69].mxu0  ;;  %v2354_v59 = vpop.f32.mrb[69].mxu1 }
 0x8c4   :  { %v2306_v63 = vpop.f32.mrb[70].mxu0  ;;  %v2355_v55 = vpop.f32.mrb[70].mxu1 }
 0x8c5   :  { %v2353_v9 = vadd.f32 %v2352_v27, %v2304_v12  ;;  %v2307_v13 = vadd.f32 %v2306_v63, %v2258_v6  ;;  %v2308_v7 = vpop.f32.mrb[71].mxu0  ;;  %v2357_v1 = vpop.f32.mrb[71].mxu1  ;;  %v3004_v63 = vld [vmem:[%s3810_s5] sm:$0xff] }
 0x8c6   :  { %v2434_v7 = vrot.slane %v3004_v63, %v3592_v56 }
 0x8c7   :  { %v2356_v14 = vadd.f32 %v2355_v55, %v2307_v13  ;;  %v2367_v28 = vadd.f32 %v2353_v9, %v3436_v58  ;;  %v2426_v55 = vrot.slane %v3004_v63, %v3585_v52  ;;  %v2501_v63 = vld [vmem:[%s3814_s9] sm:$0x7] }
 0x8c9   :  { %v2371_v17 = vsel %vm246_vm0, %v2367_v28, 0.0  ;;  %v2368_v30 = vadd.f32 %v2356_v14, %v3431_v53 }
 0x8ca   :  { %v2311_v33 = vpop.f32.mrb[72].mxu0  ;;  %v2360_v35 = vpop.f32.mrb[72].mxu1  ;;  %2372 = vadd.xlane.f32.xlu1 %v2371_v17 }
 0x8cb   :  { %v2312_v4 = vadd.f32 %v2311_v33, %v2263_v42  ;;  %v2313_v44 = vpop.f32.mrb[73].mxu0  ;;  %v2362_v38 = vpop.f32.mrb[73].mxu1  ;;  %v2374_v37 = vsel %vm246_vm0, %v2368_v30, 0.0 }
 0x8cc   :  { %v2314_v15 = vpop.f32.mrb[74].mxu0  ;;  %v2363_v24 = vpop.f32.mrb[74].mxu1  ;;  %2375 = vadd.xlane.f32.xlu0 %v2374_v37 }
 0x8cd   :  { %v2361_v29 = vadd.f32 %v2360_v35, %v2312_v4  ;;  %v2315_v46 = vadd.f32 %v2314_v15, %v2266_v25  ;;  %v2316_v31 = vpop.f32.mrb[75].mxu0  ;;  %v2365_v41 = vpop.f32.mrb[75].mxu1 }
 0x8cf   :  { %v2364_v58 = vadd.f32 %v2363_v24, %v2315_v46  ;;  %v2369_v43 = vadd.f32 %v2361_v29, %v3471_v62 }
 0x8d1   :  { %v2377_v53 = vsel %vm246_vm0, %v2369_v43, 0.0  ;;  %v2370_v47 = vadd.f32 %v2364_v58, %v3473_v18 }
 0x8d2   :  { %2378 = vadd.xlane.f32.xlu1 %v2377_v53 }
 0x8d3   :  { %v2380_v60 = vsel %vm246_vm0, %v2370_v47, 0.0 }
 0x8d4   :  { %2381 = vadd.xlane.f32.xlu0 %v2380_v60 }
 0x957   :  { %v2373_v2 = vpop.xlane.xlu1 %2372 }
 0x958   :  { %v2383_v5 = vmul.f32 0.03125, %v2373_v2 }
 0x959   :  { %v2376_v22 = vpop.xlane.xlu0 %2375 }
 0x95a   :  { %v2387_v20 = vsub.f32 %v2367_v28, %v2383_v5  ;;  %v2384_v26 = vmul.f32 0.03125, %v2376_v22 }
 0x95c   :  { %v2388_v32 = vsub.f32 %v2368_v30, %v2384_v26  ;;  %v2391_v45 = vmul.f32 %v2387_v20, %v2387_v20 }
 0x95e   :  { %v2395_v34 = vsel %vm246_vm0, %v2391_v45, 0.0  ;;  %v2392_v21 = vmul.f32 %v2388_v32, %v2388_v32 }
 0x95f   :  { %2396 = vadd.xlane.f32.xlu1 %v2395_v34  ;;  %v2379_v62 = vpop.xlane.xlu1 %2378 }
 0x960   :  { %v2385_v48 = vmul.f32 0.03125, %v2379_v62  ;;  %v2398_v16 = vsel %vm246_vm0, %v2392_v21, 0.0 }
 0x961   :  { %2399 = vadd.xlane.f32.xlu0 %v2398_v16  ;;  %v2382_v18 = vpop.xlane.xlu0 %2381 }
 0x962   :  { %v2389_v50 = vsub.f32 %v2369_v43, %v2385_v48  ;;  %v2386_v6 = vmul.f32 0.03125, %v2382_v18 }
 0x964   :  { %v2390_v3 = vsub.f32 %v2370_v47, %v2386_v6  ;;  %v2393_v51 = vmul.f32 %v2389_v50, %v2389_v50 }
 0x966   :  { %v2401_v54 = vsel %vm246_vm0, %v2393_v51, 0.0  ;;  %v2394_v23 = vmul.f32 %v2390_v3, %v2390_v3 }
 0x967   :  { %2402 = vadd.xlane.f32.xlu1 %v2401_v54 }
 0x968   :  { %v2404_v36 = vsel %vm246_vm0, %v2394_v23, 0.0 }
 0x969   :  { %2405 = vadd.xlane.f32.xlu0 %v2404_v36 }
 0x9ec   :  { %v2397_v49 = vpop.xlane.xlu1 %2396 }
 0x9ed   :  { %v2407_v57 = vmul.f32 0.03125, %v2397_v49 }
 0x9ee   :  { %v2400_v42 = vpop.xlane.xlu0 %2399 }
 0x9ef   :  { %v2411_v40 = vadd.f32 1e-05, %v2407_v57  ;;  %v2408_v8 = vmul.f32 0.03125, %v2400_v42 }
 0x9f1   :  { %2984 = vrsqrt.f32 %v2411_v40  ;;  %v2412_v10 = vadd.f32 1e-05, %v2408_v8 }
 0x9f3   :  { %2986 = vrsqrt.f32 %v2412_v10 }
 0x9f4   :  { %v2403_v25 = vpop.xlane.xlu1 %2402 }
 0x9f5   :  { %v2409_v11 = vmul.f32 0.03125, %v2403_v25 }
 0x9f6   :  { %v2406_v27 = vpop.xlane.xlu0 %2405 }
 0x9f7   :  { %v2413_v12 = vadd.f32 1e-05, %v2409_v11  ;;  %v2410_v0 = vmul.f32 0.03125, %v2406_v27 }
 0x9f9   :  { %2988 = vrsqrt.f32 %v2413_v12  ;;  %v2414_v59 = vadd.f32 1e-05, %v2410_v0 }
 0x9fb   :  { %v2985_v9 = vpop.eup %2984  ;;  %2990 = vrsqrt.f32 %v2414_v59 }
 0x9fc   :  { %v2419_v13 = vmul.f32 %v2985_v9, %v2387_v20 }
 0x9fd   :  { %v2987_v1 = vpop.eup %2986 }
 0x9fe   :  { %v2427_v14 = vmul.f32 %v2426_v55, %v2419_v13  ;;  %v2420_v28 = vmul.f32 %v2987_v1, %v2388_v32  ;;  %v2505_v13 = vrot.slane %v2501_v63, %v3271_v19 }
 0xa00   :  { %v2435_v17 = vadd.f32 %v2434_v7, %v2427_v14  ;;  %v2428_v30 = vmul.f32 %v2426_v55, %v2420_v28 }
 0xa02   :  { %v2447_v33 = vmul.f32 %v2435_v17, %v2435_v17  ;;  %v2436_v35 = vadd.f32 %v2434_v7, %v2428_v30 }
 0xa03   :  { %v2989_v4 = vpop.eup %2988 }
 0xa04   :  { %v2449_v44 = vsel %vm246_vm0, %v2447_v33, 0.0  ;;  %v2448_v38 = vmul.f32 %v2436_v35, %v2436_v35  ;;  %v2421_v37 = vmul.f32 %v2989_v4, %v2389_v50  ;;  %v2521_v33 = vrot.slane %v2501_v63, %v3280_v39 }
 0xa05   :  { %v2991_v15 = vpop.eup %2990  ;;  %2450 = vadd.xlane.f32.xlu1 %v2449_v44 }
 0xa06   :  { %v2452_v52 = vsel %vm246_vm0, %v2448_v38, 0.0  ;;  %v2429_v24 = vmul.f32 %v2426_v55, %v2421_v37  ;;  %v2422_v29 = vmul.f32 %v2991_v15, %v2390_v3 }
 0xa07   :  { %2453 = vadd.xlane.f32.xlu0 %v2452_v52 }
 0xa08   :  { %v2437_v56 = vadd.f32 %v2434_v7, %v2429_v24  ;;  %v2430_v46 = vmul.f32 %v2426_v55, %v2422_v29 }
 0xa0a   :  { %v2471_v31 = vmul.f32 %v2437_v56, %v2437_v56  ;;  %v2438_v41 = vadd.f32 %v2434_v7, %v2430_v46  ;;  %v2439_v53 = vmul.f32 %v2437_v56, %v2435_v17  ;;  %v2513_v7 = vrot.slane %v2501_v63, %v3244_v61 }
 0xa0c   :  { %v2473_v58 = vsel %vm246_vm0, %v2471_v31, 0.0  ;;  %v2472_v43 = vmul.f32 %v2438_v41, %v2438_v41  ;;  %v2440_v60 = vmul.f32 %v2438_v41, %v2436_v35  ;;  %v2441_v2 = vsel %vm246_vm0, %v2439_v53, 0.0 }
 0xa0d   :  { %2474 = vadd.xlane.f32.xlu1 %v2473_v58 }
 0xa0e   :  { %v2476_v47 = vsel %vm246_vm0, %v2472_v43, 0.0  ;;  %v2444_v5 = vsel %vm246_vm0, %v2440_v60, 0.0 }
 0xa0f   :  { %2477 = vadd.xlane.f32.xlu0 %v2476_v47 }
 0xa11   :  { %2442 = vadd.xlane.f32.xlu1 %v2441_v2 }
 0xa13   :  { %2445 = vadd.xlane.f32.xlu0 %v2444_v5 }
 0xa92   :  { %v2451_v22 = vpop.xlane.xlu1 %2450 }
 0xa93   :  { %2992 = vrsqrt.f32 %v2451_v22  ;;  %vm2457_vm5 = vcmp.eq.f32.partialorder %v2451_v22, inf  ;;  %v2460_v18 = vand.u32 2147483648, %v2451_v22  ;;  %vm2459_vm7 = vcmp.eq.f32.partialorder %v2451_v22, 0.0 }
 0xa94   :  { %v2454_v20 = vpop.xlane.xlu0 %2453 }
 0xa95   :  { %2994 = vrsqrt.f32 %v2454_v20  ;;  %vm2464_vm6 = vcmp.eq.f32.partialorder %v2454_v20, inf  ;;  %v2467_v54 = vand.u32 2147483648, %v2454_v20  ;;  %vm2466_vm9 = vcmp.eq.f32.partialorder %v2454_v20, 0.0 }
 0xa9a   :  { %v2475_v26 = vpop.xlane.xlu1 %2474 }
 0xa9b   :  { %2996 = vrsqrt.f32 %v2475_v26  ;;  %vm2481_vm8 = vcmp.eq.f32.partialorder %v2475_v26, inf  ;;  %v2484_v23 = vand.u32 2147483648, %v2475_v26  ;;  %vm2483_vm10 = vcmp.eq.f32.partialorder %v2475_v26, 0.0 }
 0xa9c   :  { %v2478_v32 = vpop.xlane.xlu0 %2477 }
 0xa9d   :  { %v2993_v45 = vpop.eup %2992  ;;  %2998 = vrsqrt.f32 %v2478_v32  ;;  %vm2488_vm11 = vcmp.eq.f32.partialorder %v2478_v32, inf  ;;  %v2491_v40 = vand.u32 2147483648, %v2478_v32  ;;  %vm2490_vm12 = vcmp.eq.f32.partialorder %v2478_v32, 0.0 }
 0xa9e   :  { %v2456_v21 = vmul.f32 %v2993_v45, %v2451_v22  ;;  %v2443_v9 = vpop.xlane.xlu1 %2442 }
 0xa9f   :  { %v2995_v34 = vpop.eup %2994 }
 0xaa0   :  { %v2463_v62 = vmul.f32 %v2995_v34, %v2454_v20  ;;  %v2458_v48 = vsel %vm2457_vm5, %v2451_v22, %v2456_v21  ;;  %v2446_v28 = vpop.xlane.xlu0 %2445 }
 0xaa1   :  { %v2461_v51 = vsel %vm2459_vm7, %v2460_v18, %v2458_v48 }
 0xaa2   :  { %v2465_v50 = vsel %vm2464_vm6, %v2454_v20, %v2463_v62  ;;  %v2469_v10 = vmax.f32 %v2461_v51, 1e-08 }
 0xaa3   :  { %v2468_v57 = vsel %vm2466_vm9, %v2467_v54, %v2465_v50 }
 0xaa4   :  { %v2470_v12 = vmax.f32 %v2468_v57, 1e-08 }
 0xaa5   :  { %v2997_v16 = vpop.eup %2996 }
 0xaa6   :  { %v2480_v6 = vmul.f32 %v2997_v16, %v2475_v26 }
 0xaa7   :  { %v2999_v3 = vpop.eup %2998 }
 0xaa8   :  { %v2482_v36 = vsel %vm2481_vm8, %v2475_v26, %v2480_v6  ;;  %v2487_v49 = vmul.f32 %v2999_v3, %v2478_v32 }
 0xaa9   :  { %v2485_v42 = vsel %vm2483_vm10, %v2484_v23, %v2482_v36 }
 0xaaa   :  { %v2489_v8 = vsel %vm2488_vm11, %v2478_v32, %v2487_v49  ;;  %v2493_v25 = vmax.f32 %v2485_v42, 1e-08 }
 0xaab   :  { %v2492_v11 = vsel %vm2490_vm12, %v2491_v40, %v2489_v8 }
 0xaac   :  { %v2495_v27 = vmul.f32 %v2493_v25, %v2469_v10  ;;  %v2494_v0 = vmax.f32 %v2492_v11, 1e-08 }
 0xaae   :  { %3000 = vrcp.f32 %v2495_v27  ;;  %v2496_v59 = vmul.f32 %v2494_v0, %v2470_v12 }
 0xab0   :  { %3002 = vrcp.f32 %v2496_v59 }
 0xab8   :  { %v3001_v55 = vpop.eup %3000 }
 0xab9   :  { %v2499_v1 = vmul.f32 %v3001_v55, %v2443_v9 }
 0xaba   :  { %v3003_v14 = vpop.eup %3002 }
 0xabb   :  { %v2508_v17 = vsub.f32 1.0, %v2499_v1  ;;  %v2500_v30 = vmul.f32 %v3003_v14, %v2446_v28  ;;  %v2506_v35 = vmul.f32 %v2505_v13, %v2499_v1 }
 0xabd   :  { %v2514_v4 = vmul.f32 %v2513_v7, %v2508_v17  ;;  %v2509_v44 = vsub.f32 1.0, %v2500_v30  ;;  %v2507_v37 = vmul.f32 %v2505_v13, %v2500_v30 }
 0xabf   :  { %v2516_v38 = vadd.f32 %v2514_v4, %v2506_v35  ;;  %v2515_v15 = vmul.f32 %v2513_v7, %v2509_v44 }
 0xac1   :  { %v2522_v52 = vadd.f32 %v2521_v33, %v2516_v38  ;;  %v2517_v24 = vadd.f32 %v2515_v15, %v2507_v37 }
 0xac3   :  { %v2524_v29 = vmax.f32 %v2522_v52, 0.0  ;;  %v2523_v19 = vadd.f32 %v2521_v33, %v2517_v24 }
 0xac5   :  { %2527 = vst.msk [vmem:[%s3815_s10] sm:$0xff] %vm2526_vm13, %v2524_v29  ;;  %v2525_v61 = vmax.f32 %v2523_v19, 0.0 }
 0xac7   :  { %2528 = vst.msk [vmem:[%s3815_s10 + $0x8] sm:$0xff] %vm2526_vm13, %v2525_v61 }
 0xac8   :  { %2533 = vsyncpa [#allocation3], 1 }

</bundles_post_ra>
